<compile_context>
chip_gen: v5e
topology: v5e:2x2
jax: 0.10.0
libtpu: 0.0.40
codegen_flags: <defaults>
</compile_context>

<pallas_src>
import functools

import jax
import jax.numpy as jnp
from jax.experimental import pallas as pl
from jax.experimental.pallas import tpu as pltpu

KH = KW = 3   # kernel_size
PAD = 1       # padding (stride = 1)
LPAD = 8      # left pad of the scratch strip -> interior store is sublane-aligned


# --------------------------------------------------------------------------- #
# Kernel
# --------------------------------------------------------------------------- #
def _dwise_kernel(w_ref, b_ref, x_ref, xtop_ref, xbot_ref, o_ref, xp_ref):
    # w_ref:    (9, CB)  f32        tap-major depthwise weights (channels on lanes)
    # b_ref:    (1, CB)  f32        bias
    # x_ref:    (1, TH, W, CB)      current H strip
    # xtop_ref: (1, 1, W, CB)       row  h*TH-1   (clamped; zeroed at image top)
    # xbot_ref: (1, 1, W, CB)       row (h+1)*TH  (clamped; zeroed at image bottom)
    # o_ref:    (1, TH, W, CB)      output strip
    # xp_ref:   (TH+2, W+2*LPAD, CB) scratch strip with halo (same dtype as x)
    TH, W, CB = o_ref.shape[1], o_ref.shape[2], o_ref.shape[3]
    h = pl.program_id(2)
    n_h = pl.num_programs(2)
    sdt = xp_ref.dtype

    # Zero only the two halo columns the taps actually read (image W border).
    zc = jnp.zeros((TH + 2, 1, CB), dtype=sdt)
    xp_ref[:, LPAD - 1:LPAD, :] = zc
    xp_ref[:, LPAD + W:LPAD + W + 1, :] = zc

    # H halo rows from neighbouring strips; zero at the image top/bottom border.
    top = xtop_ref[0, 0].astype(sdt)
    bot = xbot_ref[0, 0].astype(sdt)
    zr = jnp.zeros_like(top)
    xp_ref[0:1, LPAD:LPAD + W, :] = jnp.where(h > 0, top, zr)[None]
    xp_ref[TH + 1:TH + 2, LPAD:LPAD + W, :] = jnp.where(h < n_h - 1, bot, zr)[None]

    # Interior: one sublane-aligned store of the strip (interior starts at col 8).
    xp_ref[1:TH + 1, LPAD:LPAD + W, :] = x_ref[0].astype(sdt)

    # 9-tap shifted MAC, unrolled at trace time.  H shifts are plain vreg
    # addressing, W shifts are (static) sublane-offset reads; the lane/channel
    # axis is never shifted.  Accumulate in f32 regardless of input dtype.
    acc = jnp.zeros((TH, W, CB), dtype=jnp.float32)
    for ki in range(KH):
        for kj in range(KW):
            tap = xp_ref[ki:ki + TH, LPAD - 1 + kj:LPAD - 1 + kj + W, :]
            wv = w_ref[ki * KW + kj, :].reshape(1, 1, CB)
            acc = acc + wv * tap.astype(jnp.float32)

    bias = b_ref[0, :].reshape(1, 1, CB)
    o_ref[0] = (acc + bias).astype(o_ref.dtype)


# --------------------------------------------------------------------------- #
# Tiling / VMEM budgeting
# --------------------------------------------------------------------------- #
def _vmem_capacity_bytes():
    try:
        return int(pltpu.get_tpu_info().vmem_capacity_bytes)
    except Exception:
        return 64 * 1024 * 1024   # v7x-safe fallback


def _vmem_footprint(cb, th, W, xbytes, obytes):
    in_blk = th * W * cb * xbytes
    halo = 2 * W * cb * xbytes
    out_blk = th * W * cb * obytes
    scratch = (th + 2) * (W + 2 * LPAD) * cb * xbytes
    acc = th * W * cb * 4
    params = (KH * KW + 1) * cb * 4
    # double-buffered pipelined blocks + scratch + f32 accumulator
    return 2 * (in_blk + halo + params) + 2 * out_blk + scratch + acc


def _choose_tiles(C, H, W, xbytes, obytes, budget, c_block=None, h_block=None):
    if c_block is not None:
        c_cands = [c_block]
    else:
        c_cands = sorted({c for c in range(128, C + 1, 128) if C % c == 0} | {C},
                         reverse=True)
    if h_block is not None:
        h_cands = [h_block]
    else:
        h_cands = sorted({d for d in range(1, H + 1) if H % d == 0}, reverse=True)

    best = None
    for cb in c_cands:
        for th in h_cands:
            fp = _vmem_footprint(cb, th, W, xbytes, obytes)
            if fp <= budget and (best is None or cb * th > best[0]):
                best = (cb * th, cb, th)
    if best is not None:
        return best[1], best[2]
    # Nothing fits: best-effort smallest footprint (vmem_limit is still capped
    # at device capacity, so we never request more VMEM than exists).
    return min(c_cands), min(h_cands)


# --------------------------------------------------------------------------- #
# Wrappers
# --------------------------------------------------------------------------- #
def _dwise_nhwc_call(x, w_taps, bias, c_block, h_block):
    N, H, W, C = x.shape
    xbytes = x.dtype.itemsize
    obytes = xbytes

    capacity = _vmem_capacity_bytes()
    cap = max(capacity - (8 << 20), 16 << 20)       # headroom for compiler internals
    budget = int(cap * 0.8)                         # keep double-buffering alive

    cb, th = _choose_tiles(C, H, W, xbytes, obytes, budget, c_block, h_block)
    assert C % cb == 0 and (cb == C or cb % 128 == 0), \
        "channel block must divide C and be C or a multiple of 128"
    assert H % th == 0, "H strip must divide H"

    w_taps = w_taps.astype(jnp.float32)
    bias2 = bias.reshape(1, C).astype(jnp.float32)

    grid = (C // cb, N, H // th)                    # weights constant over inner N*H
    fp = _vmem_footprint(cb, th, W, xbytes, obytes)
    vmem_limit = int(min(cap, max(32 << 20, fp + (8 << 20))))

    flops = int((2 * KH * KW + 1) * N * C * H * W)
    bytes_accessed = int(N * H * W * C * xbytes * (1.0 + 2.0 / th)
                         + N * H * W * C * obytes + (KH * KW + 1) * C * 4)

    return pl.pallas_call(
        _dwise_kernel,
        out_shape=jax.ShapeDtypeStruct((N, H, W, C), x.dtype),
        grid=grid,
        in_specs=[
            pl.BlockSpec((KH * KW, cb), lambda c, n, h: (0, c)),        # weights
            pl.BlockSpec((1, cb), lambda c, n, h: (0, c)),              # bias
            pl.BlockSpec((1, th, W, cb), lambda c, n, h: (n, h, 0, c)),  # strip
            pl.BlockSpec((1, 1, W, cb),                                  # top halo row
                         lambda c, n, h: (n, jnp.maximum(h * th - 1, 0), 0, c)),
            pl.BlockSpec((1, 1, W, cb),                                  # bottom halo row
                         lambda c, n, h: (n, jnp.minimum((h + 1) * th, H - 1), 0, c)),
        ],
        out_specs=pl.BlockSpec((1, th, W, cb), lambda c, n, h: (n, h, 0, c)),
        scratch_shapes=[pltpu.VMEM((th + 2, W + 2 * LPAD, cb), x.dtype)],
        compiler_params=pltpu.CompilerParams(
            dimension_semantics=("parallel", "parallel", "parallel"),
            vmem_limit_bytes=vmem_limit),
        cost_estimate=pl.CostEstimate(
            flops=flops, transcendentals=0, bytes_accessed=bytes_accessed),
    )(w_taps, bias2, x, x, x)


def _auto_fold(N, C):
    """Fold factor packing batch onto the lane axis for C < 128 (128 % C == 0)."""
    if C >= 128 or (128 % C) != 0:
        return 1
    f = 128 // C
    return f if (N % f == 0) else 1


@functools.partial(jax.jit, static_argnames=("c_block", "h_block", "pack_batch"))
def dwise_nhwc(x, w_taps, bias, *, c_block=None, h_block=None, pack_batch=None):
    """Depthwise 3x3 conv (stride 1, pad 1, groups=C) + bias, NHWC layout.

    x:      (N, H, W, C)
    w_taps: (9, C)  tap-major depthwise weights (see dwise_params_from_torch)
    bias:   (C,)
    returns (N, H, W, C), same dtype as x.
    """
    N, H, W, C = x.shape
    assert w_taps.shape == (KH * KW, C)
    assert bias.shape == (C,)

    f = _auto_fold(N, C) if (pack_batch is None or pack_batch) else 1
    if f > 1:
        # Fill all 128 lanes on low-C stages by packing batch onto channels.
        # (Costs one reshape/transpose pass; pays off where VPU/ld-st binds.)
        xg = x.reshape(N // f, f, H, W, C)
        xg = jnp.transpose(xg, (0, 2, 3, 1, 4)).reshape(N // f, H, W, f * C)
        wg = jnp.tile(w_taps, (1, f))
        bg = jnp.tile(bias, (f,))
        out = _dwise_nhwc_call(xg, wg, bg, c_block, h_block)
        out = out.reshape(N // f, H, W, f, C)
        return jnp.transpose(out, (0, 3, 1, 2, 4)).reshape(N, H, W, C)

    return _dwise_nhwc_call(x, w_taps, bias, c_block, h_block)


def dwise_params_from_torch(weight, bias):
    """PyTorch depthwise weight (C,1,3,3), bias (C,) -> ((9,C) tap-major, (C,))."""
    C = weight.shape[0]
    w_taps = jnp.transpose(weight.reshape(C, KH * KW), (1, 0)).astype(jnp.float32)
    return w_taps, bias.astype(jnp.float32)


# --------------------------------------------------------------------------- #
# Pure-JAX reference (NHWC — no layout transposes anywhere on the hot path)
# --------------------------------------------------------------------------- #
def _reference_nhwc(x, weight, bias):
    C = x.shape[-1]
    w_hwio = jnp.transpose(weight, (2, 3, 1, 0)).astype(jnp.float32)  # (3,3,1,C)
    y = jax.lax.conv_general_dilated(
        x.astype(jnp.float32), w_hwio,
        window_strides=(1, 1), padding=((PAD, PAD), (PAD, PAD)),
        dimension_numbers=("NHWC", "HWIO", "NHWC"),
        feature_group_count=C, precision=jax.lax.Precision.HIGHEST)
    return y + bias.reshape(1, 1, 1, C).astype(jnp.float32)


if __name__ == "__main__":
    key = jax.random.PRNGKey(0)
    ks = jax.random.split(key, 12)

    # 1) Canonical small case: single channel block, single H strip, no fold.
    N, C, H, W = 2, 4, 16, 16
    x = jax.random.normal(ks[0], (N, H, W, C), jnp.float32)
    wt = jax.random.normal(ks[1], (C, 1, KH, KW), jnp.float32) * 0.1
    bs = jax.random.normal(ks[2], (C,), jnp.float32) * 0.1
    w_taps, b = dwise_params_from_torch(wt, bs)
    out = jax.block_until_ready(dwise_nhwc(x, w_taps, b))
    ref = _reference_nhwc(x, wt, bs)
    assert out.shape == (N, H, W, C)
    assert jnp.allclose(out, ref, atol=1e-5, rtol=1e-5), "mismatch (small case)"

    # 2) Channel-blocked + H-strip-tiled halo path (grid = (2, 2, 4)).
    N, C, H, W = 2, 256, 32, 32
    x = jax.random.normal(ks[3], (N, H, W, C), jnp.float32)
    wt = jax.random.normal(ks[4], (C, 1, KH, KW), jnp.float32) * 0.1
    bs = jax.random.normal(ks[5], (C,), jnp.float32) * 0.1
    w_taps, b = dwise_params_from_torch(wt, bs)
    out = jax.block_until_ready(dwise_nhwc(x, w_taps, b, c_block=128, h_block=8))
    ref = _reference_nhwc(x, wt, bs)
    assert jnp.allclose(out, ref, atol=1e-4, rtol=1e-4), "mismatch (tiled case)"

    # 3) Sub-128-channel stage: batch folded onto lanes (C=32, f=4 -> 128 lanes).
    N, C, H, W = 8, 32, 16, 16
    x = jax.random.normal(ks[6], (N, H, W, C), jnp.float32)
    wt = jax.random.normal(ks[7], (C, 1, KH, KW), jnp.float32) * 0.1
    bs = jax.random.normal(ks[8], (C,), jnp.float32) * 0.1
    w_taps, b = dwise_params_from_torch(wt, bs)
    out = jax.block_until_ready(dwise_nhwc(x, w_taps, b, h_block=8))
    ref = _reference_nhwc(x, wt, bs)
    assert jnp.allclose(out, ref, atol=1e-4, rtol=1e-4), "mismatch (folded case)"

    # 4) bf16 activations: bf16 strip scratch, f32 accumulation.
    N, C, H, W = 2, 128, 16, 16
    x = jax.random.normal(ks[9], (N, H, W, C), jnp.float32).astype(jnp.bfloat16)
    wt = jax.random.normal(ks[10], (C, 1, KH, KW), jnp.float32) * 0.1
    bs = jax.random.normal(ks[11], (C,), jnp.float32) * 0.1
    w_taps, b = dwise_params_from_torch(wt, bs)
    out = jax.block_until_ready(dwise_nhwc(x, w_taps, b, h_block=8))
    ref = _reference_nhwc(x, wt, bs)
    assert jnp.allclose(out.astype(jnp.float32), ref, atol=3e-2, rtol=3e-2), \
        "mismatch (bf16 case)"

    print("KERNEL_OK")
</pallas_src>

<mosaic_0001>
module attributes {stable_mosaic.version = 11 : i64} {
  func.func @_dwise_kernel(%arg0: i32, %arg1: i32, %arg2: i32, %arg3: memref<9x4xf32, #tpu.memory_space<vmem>>, %arg4: memref<1x4xf32, #tpu.memory_space<vmem>>, %arg5: memref<1x16x16x4xf32, #tpu.memory_space<vmem>>, %arg6: memref<1x1x16x4xf32, #tpu.memory_space<vmem>>, %arg7: memref<1x1x16x4xf32, #tpu.memory_space<vmem>>, %arg8: memref<1x16x16x4xf32, #tpu.memory_space<vmem>>, %arg9: memref<18x32x4xf32, #tpu.memory_space<vmem>>) attributes {dimension_semantics = [#tpu.dimension_semantics<parallel>, #tpu.dimension_semantics<parallel>, #tpu.dimension_semantics<parallel>], iteration_bounds = array<i64: 1, 2, 1>, scalar_prefetch = 0 : i64, scratch_operands = 1 : i64, tpu.core_type = #tpu.core_type<tc>, window_params = [{transform_indices = @transform_0, window_bounds = array<i64: 9, 4>}, {transform_indices = @transform_1, window_bounds = array<i64: 1, 4>}, {transform_indices = @transform_2, window_bounds = array<i64: 1, 16, 16, 4>}, {transform_indices = @transform_3, window_bounds = array<i64: 1, 1, 16, 4>}, {transform_indices = @transform_4, window_bounds = array<i64: 1, 1, 16, 4>}, {transform_indices = @transform_5, window_bounds = array<i64: 1, 16, 16, 4>}]} {
    %cst = arith.constant 0.000000e+00 : f32
    %0 = vector.broadcast %cst : f32 to vector<18x1x4xf32>
    %c0 = arith.constant 0 : index
    %c7 = arith.constant 7 : index
    %c0_0 = arith.constant 0 : index
    %1 = vector.load %arg9[%c0, %c7, %c0_0] : memref<18x32x4xf32, #tpu.memory_space<vmem>>, vector<18x1x4xf32>
    tpu.vector_store %arg9[%c0, %c7, %c0_0], %0 {strides = array<i32>} : memref<18x32x4xf32, #tpu.memory_space<vmem>>, vector<18x1x4xf32>,
    %c0_1 = arith.constant 0 : index
    %c24 = arith.constant 24 : index
    %c0_2 = arith.constant 0 : index
    %2 = vector.load %arg9[%c0_1, %c24, %c0_2] : memref<18x32x4xf32, #tpu.memory_space<vmem>>, vector<18x1x4xf32>
    tpu.vector_store %arg9[%c0_1, %c24, %c0_2], %0 {strides = array<i32>} : memref<18x32x4xf32, #tpu.memory_space<vmem>>, vector<18x1x4xf32>,
    %c0_3 = arith.constant 0 : index
    %c0_4 = arith.constant 0 : index
    %c0_5 = arith.constant 0 : index
    %c0_6 = arith.constant 0 : index
    %3 = vector.load %arg6[%c0_3, %c0_4, %c0_5, %c0_6] : memref<1x1x16x4xf32, #tpu.memory_space<vmem>>, vector<1x1x16x4xf32>
    %4 = vector.shape_cast %3 : vector<1x1x16x4xf32> to vector<16x4xf32>
    %c0_7 = arith.constant 0 : index
    %c0_8 = arith.constant 0 : index
    %c0_9 = arith.constant 0 : index
    %c0_10 = arith.constant 0 : index
    %5 = vector.load %arg7[%c0_7, %c0_8, %c0_9, %c0_10] : memref<1x1x16x4xf32, #tpu.memory_space<vmem>>, vector<1x1x16x4xf32>
    %6 = vector.shape_cast %5 : vector<1x1x16x4xf32> to vector<16x4xf32>
    %cst_11 = arith.constant 0.000000e+00 : f32
    %7 = vector.broadcast %cst_11 : f32 to vector<16x4xf32>
    %c0_i32 = arith.constant 0 : i32
    %8 = arith.cmpi sgt, %arg2, %c0_i32 : i32
    %9 = arith.select %8, %4, %7 : vector<16x4xf32>
    %10 = vector.shape_cast %9 : vector<16x4xf32> to vector<1x16x4xf32>
    %c0_12 = arith.constant 0 : index
    %c8 = arith.constant 8 : index
    %c0_13 = arith.constant 0 : index
    %11 = vector.load %arg9[%c0_12, %c8, %c0_13] : memref<18x32x4xf32, #tpu.memory_space<vmem>>, vector<1x16x4xf32>
    tpu.vector_store %arg9[%c0_12, %c8, %c0_13], %10 {strides = array<i32>} : memref<18x32x4xf32, #tpu.memory_space<vmem>>, vector<1x16x4xf32>,
    %c0_i32_14 = arith.constant 0 : i32
    %12 = arith.cmpi slt, %arg2, %c0_i32_14 : i32
    %13 = arith.select %12, %6, %7 : vector<16x4xf32>
    %14 = vector.shape_cast %13 : vector<16x4xf32> to vector<1x16x4xf32>
    %c17 = arith.constant 17 : index
    %c8_15 = arith.constant 8 : index
    %c0_16 = arith.constant 0 : index
    %15 = vector.load %arg9[%c17, %c8_15, %c0_16] : memref<18x32x4xf32, #tpu.memory_space<vmem>>, vector<1x16x4xf32>
    tpu.vector_store %arg9[%c17, %c8_15, %c0_16], %14 {strides = array<i32>} : memref<18x32x4xf32, #tpu.memory_space<vmem>>, vector<1x16x4xf32>,
    %c0_17 = arith.constant 0 : index
    %c0_18 = arith.constant 0 : index
    %c0_19 = arith.constant 0 : index
    %c0_20 = arith.constant 0 : index
    %16 = vector.load %arg5[%c0_17, %c0_18, %c0_19, %c0_20] : memref<1x16x16x4xf32, #tpu.memory_space<vmem>>, vector<1x16x16x4xf32>
    %17 = vector.shape_cast %16 : vector<1x16x16x4xf32> to vector<16x16x4xf32>
    %c1 = arith.constant 1 : index
    %c8_21 = arith.constant 8 : index
    %c0_22 = arith.constant 0 : index
    %18 = vector.load %arg9[%c1, %c8_21, %c0_22] : memref<18x32x4xf32, #tpu.memory_space<vmem>>, vector<16x16x4xf32>
    tpu.vector_store %arg9[%c1, %c8_21, %c0_22], %17 {strides = array<i32>} : memref<18x32x4xf32, #tpu.memory_space<vmem>>, vector<16x16x4xf32>,
    %cst_23 = arith.constant 0.000000e+00 : f32
    %19 = vector.broadcast %cst_23 : f32 to vector<16x16x4xf32>
    %c0_24 = arith.constant 0 : index
    %c7_25 = arith.constant 7 : index
    %c0_26 = arith.constant 0 : index
    %20 = vector.load %arg9[%c0_24, %c7_25, %c0_26] : memref<18x32x4xf32, #tpu.memory_space<vmem>>, vector<16x16x4xf32>
    %c0_27 = arith.constant 0 : index
    %c0_28 = arith.constant 0 : index
    %21 = vector.load %arg3[%c0_27, %c0_28] : memref<9x4xf32, #tpu.memory_space<vmem>>, vector<1x4xf32>
    %22 = vector.shape_cast %21 : vector<1x4xf32> to vector<4xf32>
    %23 = vector.shape_cast %22 : vector<4xf32> to vector<1x1x4xf32>
    %24 = vector.broadcast %23 : vector<1x1x4xf32> to vector<16x16x4xf32>
    %25 = arith.mulf %24, %20 : vector<16x16x4xf32>
    %26 = arith.addf %19, %25 : vector<16x16x4xf32>
    %c0_29 = arith.constant 0 : index
    %c8_30 = arith.constant 8 : index
    %c0_31 = arith.constant 0 : index
    %27 = vector.load %arg9[%c0_29, %c8_30, %c0_31] : memref<18x32x4xf32, #tpu.memory_space<vmem>>, vector<16x16x4xf32>
    %c1_32 = arith.constant 1 : index
    %c0_33 = arith.constant 0 : index
    %28 = vector.load %arg3[%c1_32, %c0_33] : memref<9x4xf32, #tpu.memory_space<vmem>>, vector<1x4xf32>
    %29 = vector.shape_cast %28 : vector<1x4xf32> to vector<4xf32>
    %30 = vector.shape_cast %29 : vector<4xf32> to vector<1x1x4xf32>
    %31 = vector.broadcast %30 : vector<1x1x4xf32> to vector<16x16x4xf32>
    %32 = arith.mulf %31, %27 : vector<16x16x4xf32>
    %33 = arith.addf %26, %32 : vector<16x16x4xf32>
    %c0_34 = arith.constant 0 : index
    %c9 = arith.constant 9 : index
    %c0_35 = arith.constant 0 : index
    %34 = vector.load %arg9[%c0_34, %c9, %c0_35] : memref<18x32x4xf32, #tpu.memory_space<vmem>>, vector<16x16x4xf32>
    %c2 = arith.constant 2 : index
    %c0_36 = arith.constant 0 : index
    %35 = vector.load %arg3[%c2, %c0_36] : memref<9x4xf32, #tpu.memory_space<vmem>>, vector<1x4xf32>
    %36 = vector.shape_cast %35 : vector<1x4xf32> to vector<4xf32>
    %37 = vector.shape_cast %36 : vector<4xf32> to vector<1x1x4xf32>
    %38 = vector.broadcast %37 : vector<1x1x4xf32> to vector<16x16x4xf32>
    %39 = arith.mulf %38, %34 : vector<16x16x4xf32>
    %40 = arith.addf %33, %39 : vector<16x16x4xf32>
    %c1_37 = arith.constant 1 : index
    %c7_38 = arith.constant 7 : index
    %c0_39 = arith.constant 0 : index
    %41 = vector.load %arg9[%c1_37, %c7_38, %c0_39] : memref<18x32x4xf32, #tpu.memory_space<vmem>>, vector<16x16x4xf32>
    %c3 = arith.constant 3 : index
    %c0_40 = arith.constant 0 : index
    %42 = vector.load %arg3[%c3, %c0_40] : memref<9x4xf32, #tpu.memory_space<vmem>>, vector<1x4xf32>
    %43 = vector.shape_cast %42 : vector<1x4xf32> to vector<4xf32>
    %44 = vector.shape_cast %43 : vector<4xf32> to vector<1x1x4xf32>
    %45 = vector.broadcast %44 : vector<1x1x4xf32> to vector<16x16x4xf32>
    %46 = arith.mulf %45, %41 : vector<16x16x4xf32>
    %47 = arith.addf %40, %46 : vector<16x16x4xf32>
    %c1_41 = arith.constant 1 : index
    %c8_42 = arith.constant 8 : index
    %c0_43 = arith.constant 0 : index
    %48 = vector.load %arg9[%c1_41, %c8_42, %c0_43] : memref<18x32x4xf32, #tpu.memory_space<vmem>>, vector<16x16x4xf32>
    %c4 = arith.constant 4 : index
    %c0_44 = arith.constant 0 : index
    %49 = vector.load %arg3[%c4, %c0_44] : memref<9x4xf32, #tpu.memory_space<vmem>>, vector<1x4xf32>
    %50 = vector.shape_cast %49 : vector<1x4xf32> to vector<4xf32>
    %51 = vector.shape_cast %50 : vector<4xf32> to vector<1x1x4xf32>
    %52 = vector.broadcast %51 : vector<1x1x4xf32> to vector<16x16x4xf32>
    %53 = arith.mulf %52, %48 : vector<16x16x4xf32>
    %54 = arith.addf %47, %53 : vector<16x16x4xf32>
    %c1_45 = arith.constant 1 : index
    %c9_46 = arith.constant 9 : index
    %c0_47 = arith.constant 0 : index
    %55 = vector.load %arg9[%c1_45, %c9_46, %c0_47] : memref<18x32x4xf32, #tpu.memory_space<vmem>>, vector<16x16x4xf32>
    %c5 = arith.constant 5 : index
    %c0_48 = arith.constant 0 : index
    %56 = vector.load %arg3[%c5, %c0_48] : memref<9x4xf32, #tpu.memory_space<vmem>>, vector<1x4xf32>
    %57 = vector.shape_cast %56 : vector<1x4xf32> to vector<4xf32>
    %58 = vector.shape_cast %57 : vector<4xf32> to vector<1x1x4xf32>
    %59 = vector.broadcast %58 : vector<1x1x4xf32> to vector<16x16x4xf32>
    %60 = arith.mulf %59, %55 : vector<16x16x4xf32>
    %61 = arith.addf %54, %60 : vector<16x16x4xf32>
    %c2_49 = arith.constant 2 : index
    %c7_50 = arith.constant 7 : index
    %c0_51 = arith.constant 0 : index
    %62 = vector.load %arg9[%c2_49, %c7_50, %c0_51] : memref<18x32x4xf32, #tpu.memory_space<vmem>>, vector<16x16x4xf32>
    %c6 = arith.constant 6 : index
    %c0_52 = arith.constant 0 : index
    %63 = vector.load %arg3[%c6, %c0_52] : memref<9x4xf32, #tpu.memory_space<vmem>>, vector<1x4xf32>
    %64 = vector.shape_cast %63 : vector<1x4xf32> to vector<4xf32>
    %65 = vector.shape_cast %64 : vector<4xf32> to vector<1x1x4xf32>
    %66 = vector.broadcast %65 : vector<1x1x4xf32> to vector<16x16x4xf32>
    %67 = arith.mulf %66, %62 : vector<16x16x4xf32>
    %68 = arith.addf %61, %67 : vector<16x16x4xf32>
    %c2_53 = arith.constant 2 : index
    %c8_54 = arith.constant 8 : index
    %c0_55 = arith.constant 0 : index
    %69 = vector.load %arg9[%c2_53, %c8_54, %c0_55] : memref<18x32x4xf32, #tpu.memory_space<vmem>>, vector<16x16x4xf32>
    %c7_56 = arith.constant 7 : index
    %c0_57 = arith.constant 0 : index
    %70 = vector.load %arg3[%c7_56, %c0_57] : memref<9x4xf32, #tpu.memory_space<vmem>>, vector<1x4xf32>
    %71 = vector.shape_cast %70 : vector<1x4xf32> to vector<4xf32>
    %72 = vector.shape_cast %71 : vector<4xf32> to vector<1x1x4xf32>
    %73 = vector.broadcast %72 : vector<1x1x4xf32> to vector<16x16x4xf32>
    %74 = arith.mulf %73, %69 : vector<16x16x4xf32>
    %75 = arith.addf %68, %74 : vector<16x16x4xf32>
    %c2_58 = arith.constant 2 : index
    %c9_59 = arith.constant 9 : index
    %c0_60 = arith.constant 0 : index
    %76 = vector.load %arg9[%c2_58, %c9_59, %c0_60] : memref<18x32x4xf32, #tpu.memory_space<vmem>>, vector<16x16x4xf32>
    %c8_61 = arith.constant 8 : index
    %c0_62 = arith.constant 0 : index
    %77 = vector.load %arg3[%c8_61, %c0_62] : memref<9x4xf32, #tpu.memory_space<vmem>>, vector<1x4xf32>
    %78 = vector.shape_cast %77 : vector<1x4xf32> to vector<4xf32>
    %79 = vector.shape_cast %78 : vector<4xf32> to vector<1x1x4xf32>
    %80 = vector.broadcast %79 : vector<1x1x4xf32> to vector<16x16x4xf32>
    %81 = arith.mulf %80, %76 : vector<16x16x4xf32>
    %82 = arith.addf %75, %81 : vector<16x16x4xf32>
    %c0_63 = arith.constant 0 : index
    %c0_64 = arith.constant 0 : index
    %83 = vector.load %arg4[%c0_63, %c0_64] : memref<1x4xf32, #tpu.memory_space<vmem>>, vector<1x4xf32>
    %84 = vector.shape_cast %83 : vector<1x4xf32> to vector<4xf32>
    %85 = vector.shape_cast %84 : vector<4xf32> to vector<1x1x4xf32>
    %86 = vector.broadcast %85 : vector<1x1x4xf32> to vector<16x16x4xf32>
    %87 = arith.addf %82, %86 : vector<16x16x4xf32>
    %c0_65 = arith.constant 0 : index
    %c0_66 = arith.constant 0 : index
    %c0_67 = arith.constant 0 : index
    %c0_68 = arith.constant 0 : index
    %88 = vector.load %arg8[%c0_65, %c0_66, %c0_67, %c0_68] : memref<1x16x16x4xf32, #tpu.memory_space<vmem>>, vector<1x16x16x4xf32>
    %89 = vector.shape_cast %88 : vector<1x16x16x4xf32> to vector<16x16x4xf32>
    %90 = vector.shape_cast %87 : vector<16x16x4xf32> to vector<1x16x16x4xf32>
    tpu.vector_store %arg8[%c0_65, %c0_66, %c0_67, %c0_68], %90 {strides = array<i32>} : memref<1x16x16x4xf32, #tpu.memory_space<vmem>>, vector<1x16x16x4xf32>,
    return
  }
  func.func @transform_0(%arg0: i32, %arg1: i32, %arg2: i32) -> (i32, i32) {
    %c0_i32 = arith.constant 0 : i32
    %c0_i32_0 = arith.constant 0 : i32
    return %c0_i32, %arg0 : i32, i32
  }
  func.func @transform_1(%arg0: i32, %arg1: i32, %arg2: i32) -> (i32, i32) {
    %c0_i32 = arith.constant 0 : i32
    %c0_i32_0 = arith.constant 0 : i32
    return %c0_i32, %arg0 : i32, i32
  }
  func.func @transform_2(%arg0: i32, %arg1: i32, %arg2: i32) -> (i32, i32, i32, i32) {
    %c0_i32 = arith.constant 0 : i32
    %c0_i32_0 = arith.constant 0 : i32
    return %arg1, %arg2, %c0_i32, %arg0 : i32, i32, i32, i32
  }
  func.func @transform_3(%arg0: i32, %arg1: i32, %arg2: i32) -> (i32, i32, i32, i32) {
    %c16_i32 = arith.constant 16 : i32
    %0 = arith.muli %arg2, %c16_i32 : i32
    %c1_i32 = arith.constant 1 : i32
    %1 = arith.subi %0, %c1_i32 : i32
    %c0_i32 = arith.constant 0 : i32
    %2 = arith.maxsi %1, %c0_i32 : i32
    %c0_i32_0 = arith.constant 0 : i32
    %c0_i32_1 = arith.constant 0 : i32
    return %arg1, %2, %c0_i32_0, %arg0 : i32, i32, i32, i32
  }
  func.func @transform_4(%arg0: i32, %arg1: i32, %arg2: i32) -> (i32, i32, i32, i32) {
    %c1_i32 = arith.constant 1 : i32
    %0 = arith.addi %arg2, %c1_i32 : i32
    %c16_i32 = arith.constant 16 : i32
    %1 = arith.muli %0, %c16_i32 : i32
    %c15_i32 = arith.constant 15 : i32
    %2 = arith.minsi %1, %c15_i32 : i32
    %c0_i32 = arith.constant 0 : i32
    %c0_i32_0 = arith.constant 0 : i32
    return %arg1, %2, %c0_i32, %arg0 : i32, i32, i32, i32
  }
  func.func @transform_5(%arg0: i32, %arg1: i32, %arg2: i32) -> (i32, i32, i32, i32) {
    %c0_i32 = arith.constant 0 : i32
    %c0_i32_0 = arith.constant 0 : i32
    return %arg1, %arg2, %c0_i32, %arg0 : i32, i32, i32, i32
  }
}

</mosaic_0001>

<bundles_post_ra>
// kernel: dwise_nhwc.1
= control target key start
LH: loop header
LB: loop body
LE: loop exit
PB: predicated region body
PF: predicated region fallthrough
CT: control target
= control target key end

     0   :  { %s1856_s18 = smov 0   ;;  %s1858_s19 = smov 0   ;;  %s2572_s0 = inlined_call_operand.vmem [shape: f32[9,4], index: 0, kind: input, shape index: {}]   ;;  %s2573_s1 = inlined_call_operand.vmem [shape: f32[1,4], index: 1, kind: input, shape index: {}]   ;;  %s2574_s2 = inlined_call_operand.vmem [shape: f32[2,16,16,4], index: 2, kind: input, shape index: {}, may-alias: {2,3,4}]   ;;  %s2575_s3 = inlined_call_operand.vmem [shape: f32[2,16,16,4], index: 3, kind: input, shape index: {}, may-alias: {2,3,4}]   ;;  %s2576_s4 = inlined_call_operand.vmem [shape: f32[2,16,16,4], index: 4, kind: input, shape index: {}, may-alias: {2,3,4}]   ;;  %s2577_s5 = inlined_call_operand.vmem [shape: f32[2,16,16,4], index: 5, kind: output, shape index: {}]  }
   0x1   :  { %s1860_s20 = smov 0  }
   0x2 LB: > { %s30_s3 = sadd.s32 1, %s1819_s19  ;;  %p1740_p0 = scmp.ge.s32.totalorder %s1823_s20, 1  ;;  %s1823_s20 = sphi %s1860_s20, %s15_s20   ;;  %s1819_s19 = sphi %s1858_s19, %s2579_s19   ;;  %s1815_s18 = sphi %s1856_s18, %s2578_s18  }
   0x3   : > { %p32_p1 = scmp.ge.s32.totalorder %s30_s3, 2  ;;  %p314_p2 = scmp.lt.s32.totalorder %s1823_s20, 3 }
   0x5   : > { %s2581_s3 = smov (%p32_p1, %s30_s3), 0  ;;  %p315_p3 = pnand %p1740_p0, %p314_p2 }
   0x6   : > { %p405_p4 = scmp.lt.s32.totalorder (!%p315_p3), %s1815_s18, 1 }
   0x7   : > { %318 = sbr.rel (%p315_p3) target bundleno = 214 (0xd6), region = 40 }
   0xc   : > { %vm472_vm0 = vcmask 24576   ;;  %v1825_v0 = vmov 0.0   ;;  %s2583_s18 = smov (!%p405_p4, %s1815_s18), 1  ;;  %vm519_vm1 = vcmask 31744   ;;  %v1936_v5 = vld [vmem:[%s2572_s0] ss:$0 sm:$0xff] }
   0xd   : > { %473 = vst.msk [vmem:[#allocation2 + $0x7] sm:$0x1] %vm472_vm0, %v1825_v0  ;;  %s1751_s4 = sshll.u32 %s2583_s18, 8  ;;  %v1941_v6 = vld [vmem:[%s2572_s0 + $0x1] ss:$0 sm:$0xff] }
   0xe   : > { %474 = vst.msk [vmem:[#allocation2 + $0x27] sm:$0x1] %vm472_vm0, %v1825_v0  ;;  %s1921_s23 = scalar_lea.vmem %s2574_s2, %s1751_s4  ;;  %v1948_v8 = vld [vmem:[%s2572_s0 + $0x2] ss:$0 sm:$0xff]  ;;  %v1962_v18 = vld [vmem:[%s2572_s0 + $0x3] ss:$0 sm:$0xff]  ;;  %s2142_s25 = scalar_lea.vmem %s2577_s5, %s1751_s4 }
   0xf   : > { %475 = vst.msk [vmem:[#allocation2 + $0x47] sm:$0x1] %vm472_vm0, %v1825_v0  ;;  %v531_v1 = vld [vmem:[%s1921_s23] sm:$0xff]  ;;  %v532_v2 = vld [vmem:[%s1921_s23 + $0x8] sm:$0xff]  ;;  %v533_v3 = vld [vmem:[%s1921_s23 + $0x10] sm:$0xff] }
  0x10   : > { %476 = vst.msk [vmem:[#allocation2 + $0x67] sm:$0x1] %vm472_vm0, %v1825_v0  ;;  %v534_v4 = vld [vmem:[%s1921_s23 + $0x18] sm:$0xff]  ;;  %v535_v7 = vld [vmem:[%s1921_s23 + $0x20] sm:$0xff]  ;;  %v536_v9 = vld [vmem:[%s1921_s23 + $0x28] sm:$0xff] }
  0x11   : > { %477 = vst.msk [vmem:[#allocation2 + $0x87] sm:$0x1] %vm472_vm0, %v1825_v0  ;;  %v537_v10 = vld [vmem:[%s1921_s23 + $0x30] sm:$0xff]  ;;  %v538_v11 = vld [vmem:[%s1921_s23 + $0x38] sm:$0xff]  ;;  %v539_v12 = vld [vmem:[%s1921_s23 + $0x40] sm:$0xff] }
  0x12   : > { %478 = vst.msk [vmem:[#allocation2 + $0xa7] sm:$0x1] %vm472_vm0, %v1825_v0  ;;  %v540_v20 = vld [vmem:[%s1921_s23 + $0x48] sm:$0xff]  ;;  %v541_v25 = vld [vmem:[%s1921_s23 + $0x50] sm:$0xff]  ;;  %v542_v26 = vld [vmem:[%s1921_s23 + $0x58] sm:$0xff] }
  0x13   : > { %479 = vst.msk [vmem:[#allocation2 + $0xc7] sm:$0x1] %vm472_vm0, %v1825_v0  ;;  %v1974_v28 = vld [vmem:[%s2572_s0 + $0x4] ss:$0 sm:$0xff]  ;;  %v1983_v34 = vld [vmem:[%s2572_s0 + $0x5] ss:$0 sm:$0xff] }
  0x14   : > { %480 = vst.msk [vmem:[#allocation2 + $0xe7] sm:$0x1] %vm472_vm0, %v1825_v0  ;;  %v543_v31 = vld [vmem:[%s1921_s23 + $0x60] sm:$0xff]  ;;  %v544_v35 = vld [vmem:[%s1921_s23 + $0x68] sm:$0xff]  ;;  %v545_v52 = vld [vmem:[%s1921_s23 + $0x70] sm:$0xff] }
  0x15   : > { %481 = vst.msk [vmem:[#allocation2 + $0x107] sm:$0x1] %vm472_vm0, %v1825_v0  ;;  %v1992_v41 = vld [vmem:[%s2572_s0 + $0x6] ss:$0 sm:$0xff]  ;;  %v1997_v42 = vld [vmem:[%s2572_s0 + $0x7] ss:$0 sm:$0xff] }
  0x16   : > { %482 = vst.msk [vmem:[#allocation2 + $0x127] sm:$0x1] %vm472_vm0, %v1825_v0  ;;  %v2011_v54 = vld [vmem:[%s2572_s0 + $0x8] ss:$0 sm:$0xff]  ;;  %v546_v55 = vld [vmem:[%s1921_s23 + $0x78] sm:$0xff]  ;;  %v547_v62 = vld [vmem:[%s1921_s23 + $0x80] sm:$0xff] }
  0x17   : > { %483 = vst.msk [vmem:[#allocation2 + $0x147] sm:$0x1] %vm472_vm0, %v1825_v0 }
  0x18   : > { %484 = vst.msk [vmem:[#allocation2 + $0x167] sm:$0x1] %vm472_vm0, %v1825_v0 }
  0x19   : > { %485 = vst.msk [vmem:[#allocation2 + $0x187] sm:$0x1] %vm472_vm0, %v1825_v0 }
  0x1a   : > { %486 = vst.msk [vmem:[#allocation2 + $0x1a7] sm:$0x1] %vm472_vm0, %v1825_v0 }
  0x1b   : > { %487 = vst.msk [vmem:[#allocation2 + $0x1c7] sm:$0x1] %vm472_vm0, %v1825_v0 }
  0x1c   : > { %488 = vst.msk [vmem:[#allocation2 + $0x1e7] sm:$0x1] %vm472_vm0, %v1825_v0 }
  0x1d   : > { %489 = vst.msk [vmem:[#allocation2 + $0x207] sm:$0x1] %vm472_vm0, %v1825_v0 }
  0x1e   : > { %490 = vst.msk [vmem:[#allocation2 + $0x227] sm:$0x1] %vm472_vm0, %v1825_v0 }
  0x1f   : > { %491 = vst.msk [vmem:[#allocation2 + $0x18] sm:$0x1] %vm472_vm0, %v1825_v0 }
  0x20   : > { %492 = vst.msk [vmem:[#allocation2 + $0x38] sm:$0x1] %vm472_vm0, %v1825_v0 }
  0x21   : > { %493 = vst.msk [vmem:[#allocation2 + $0x58] sm:$0x1] %vm472_vm0, %v1825_v0 }
  0x22   : > { %494 = vst.msk [vmem:[#allocation2 + $0x78] sm:$0x1] %vm472_vm0, %v1825_v0 }
  0x23   : > { %495 = vst.msk [vmem:[#allocation2 + $0x98] sm:$0x1] %vm472_vm0, %v1825_v0 }
  0x24   : > { %496 = vst.msk [vmem:[#allocation2 + $0xb8] sm:$0x1] %vm472_vm0, %v1825_v0 }
  0x25   : > { %497 = vst.msk [vmem:[#allocation2 + $0xd8] sm:$0x1] %vm472_vm0, %v1825_v0 }
  0x26   : > { %498 = vst.msk [vmem:[#allocation2 + $0xf8] sm:$0x1] %vm472_vm0, %v1825_v0 }
  0x27   : > { %499 = vst.msk [vmem:[#allocation2 + $0x118] sm:$0x1] %vm472_vm0, %v1825_v0 }
  0x28   : > { %500 = vst.msk [vmem:[#allocation2 + $0x138] sm:$0x1] %vm472_vm0, %v1825_v0 }
  0x29   : > { %501 = vst.msk [vmem:[#allocation2 + $0x158] sm:$0x1] %vm472_vm0, %v1825_v0 }
  0x2a   : > { %502 = vst.msk [vmem:[#allocation2 + $0x178] sm:$0x1] %vm472_vm0, %v1825_v0 }
  0x2b   : > { %503 = vst.msk [vmem:[#allocation2 + $0x198] sm:$0x1] %vm472_vm0, %v1825_v0 }
  0x2c   : > { %504 = vst.msk [vmem:[#allocation2 + $0x1b8] sm:$0x1] %vm472_vm0, %v1825_v0 }
  0x2d   : > { %505 = vst.msk [vmem:[#allocation2 + $0x1d8] sm:$0x1] %vm472_vm0, %v1825_v0 }
  0x2e   : > { %506 = vst.msk [vmem:[#allocation2 + $0x1f8] sm:$0x1] %vm472_vm0, %v1825_v0 }
  0x2f   : > { %507 = vst.msk [vmem:[#allocation2 + $0x218] sm:$0x1] %vm472_vm0, %v1825_v0 }
  0x30   : > { %508 = vst.msk [vmem:[#allocation2 + $0x238] sm:$0x1] %vm472_vm0, %v1825_v0 }
  0x31   : > { %520 = vst.msk [vmem:[#allocation2 + $0x8] sm:$0xff] %vm519_vm1, %v1825_v0 }
  0x32   : > { %521 = vst.msk [vmem:[#allocation2 + $0x10] sm:$0xff] %vm519_vm1, %v1825_v0 }
  0x33   : > { %529 = vst.msk [vmem:[#allocation2 + $0x228] sm:$0xff] %vm519_vm1, %v1825_v0 }
  0x34   : > { %530 = vst.msk [vmem:[#allocation2 + $0x230] sm:$0xff] %vm519_vm1, %v1825_v0 }
  0x35   : > { %564 = vst.msk [vmem:[#allocation2 + $0x28] sm:$0xff] %vm519_vm1, %v531_v1 }
  0x36   : > { %565 = vst.msk [vmem:[#allocation2 + $0x30] sm:$0xff] %vm519_vm1, %v532_v2  ;;  %v548_v2 = vld [vmem:[%s1921_s23 + $0x88] sm:$0xff] }
  0x37   : > { %566 = vst.msk [vmem:[#allocation2 + $0x48] sm:$0xff] %vm519_vm1, %v533_v3 }
  0x38   : > { %567 = vst.msk [vmem:[#allocation2 + $0x50] sm:$0xff] %vm519_vm1, %v534_v4  ;;  %v596_v13 = vld [vmem:[#allocation2 + $0x7] sm:$0xff] }
  0x39   : > { %v694_v14 = vld [vmem:[#allocation2 + $0x8] sm:$0xff]  ;;  %568 = vst.msk [vmem:[#allocation2 + $0x68] sm:$0xff] %vm519_vm1, %v535_v7  ;;  %v630_v15 = vmul.f32 %v1936_v5, %v596_v13  ;;  %v695_v23 = vld [vmem:[#allocation2 + $0x10] sm:$0xff] }
  0x3a   : > { %v728_v16 = vmul.f32 %v1941_v6, %v694_v14  ;;  %v792_v17 = vld [vmem:[#allocation2 + $0x9] sm:$0xff]  ;;  %569 = vst.msk [vmem:[#allocation2 + $0x70] sm:$0xff] %vm519_vm1, %v536_v9  ;;  %v793_v24 = vld [vmem:[#allocation2 + $0x11] sm:$0xff]  ;;  %v729_v29 = vmul.f32 %v1941_v6, %v695_v23  ;;  %v551_v23 = vld [vmem:[%s1921_s23 + $0xa0] sm:$0xff] }
  0x3b   : > { %v597_v19 = vld [vmem:[#allocation2 + $0xf] sm:$0xff]  ;;  %v826_v21 = vmul.f32 %v1948_v8, %v792_v17  ;;  %570 = vst.msk [vmem:[#allocation2 + $0x88] sm:$0xff] %vm519_vm1, %v537_v10  ;;  %v827_v30 = vmul.f32 %v1948_v8, %v793_v24  ;;  %v550_v17 = vld [vmem:[%s1921_s23 + $0x98] sm:$0xff] }
  0x3c   : > { %v631_v22 = vmul.f32 %v1936_v5, %v597_v19  ;;  %v760_v27 = vadd.f32 %v728_v16, %v630_v15  ;;  %571 = vst.msk [vmem:[#allocation2 + $0x90] sm:$0xff] %vm519_vm1, %v538_v11  ;;  %v890_v32 = vld [vmem:[#allocation2 + $0x27] sm:$0xff] }
  0x3d   : > { %v988_v33 = vld [vmem:[#allocation2 + $0x28] sm:$0xff]  ;;  %572 = vst.msk [vmem:[#allocation2 + $0xa8] sm:$0xff] %vm519_vm1, %v539_v12  ;;  %v924_v37 = vmul.f32 %v1962_v18, %v890_v32  ;;  %v989_v44 = vld [vmem:[#allocation2 + $0x30] sm:$0xff]  ;;  %v632_v51 = vmul.f32 %v1936_v5, %v890_v32 }
  0x3e   : > { %v858_v36 = vadd.f32 %v826_v21, %v760_v27  ;;  %v1086_v38 = vld [vmem:[#allocation2 + $0x29] sm:$0xff]  ;;  %v761_v39 = vadd.f32 %v729_v29, %v631_v22  ;;  %573 = vst.msk [vmem:[#allocation2 + $0xb0] sm:$0xff] %vm519_vm1, %v540_v20  ;;  %v1022_v46 = vmul.f32 %v1974_v28, %v988_v33  ;;  %v1087_v50 = vld [vmem:[#allocation2 + $0x31] sm:$0xff]  ;;  %v1023_v59 = vmul.f32 %v1974_v28, %v989_v44 }
  0x3f   : > { %v891_v40 = vld [vmem:[#allocation2 + $0x2f] sm:$0xff]  ;;  %574 = vst.msk [vmem:[#allocation2 + $0xc8] sm:$0xff] %vm519_vm1, %v541_v25  ;;  %v1185_v47 = vld [vmem:[#allocation2 + $0x47] sm:$0xff]  ;;  %v1120_v53 = vmul.f32 %v1983_v34, %v1086_v38  ;;  %v730_v61 = vmul.f32 %v1941_v6, %v988_v33  ;;  %v1121_v1 = vmul.f32 %v1983_v34, %v1087_v50  ;;  %v828_v11 = vmul.f32 %v1948_v8, %v1086_v38 }
  0x40   : > { %v925_v43 = vmul.f32 %v1962_v18, %v891_v40  ;;  %v956_v45 = vadd.f32 %v924_v37, %v858_v36  ;;  %v2002_v48 = vld [vmem:[#allocation2 + $0x48] sm:$0xff]  ;;  %v859_v49 = vadd.f32 %v827_v30, %v761_v39  ;;  %575 = vst.msk [vmem:[#allocation2 + $0xd0] sm:$0xff] %vm519_vm1, %v542_v26  ;;  %v1219_v63 = vmul.f32 %v1992_v41, %v1185_v47  ;;  %v2029_v7 = vld [vmem:[#allocation2 + $0x50] sm:$0xff] }
  0x41   : > { %576 = vst.msk [vmem:[#allocation2 + $0xe8] sm:$0xff] %vm519_vm1, %v543_v31  ;;  %v2015_v57 = vld [vmem:[#allocation2 + $0x49] sm:$0xff]  ;;  %v1317_v0 = vmul.f32 %v1997_v42, %v2002_v48  ;;  %v2031_v9 = vld [vmem:[#allocation2 + $0x51] sm:$0xff]  ;;  %v762_v10 = vadd.f32 %v730_v61, %v632_v51  ;;  %v633_v15 = vmul.f32 %v1936_v5, %v891_v40  ;;  %v731_v16 = vmul.f32 %v1941_v6, %v989_v44 }
  0x42   : > { %v1054_v56 = vadd.f32 %v1022_v46, %v956_v45  ;;  %v957_v58 = vadd.f32 %v925_v43, %v859_v49  ;;  %v2018_v60 = vld [vmem:[#allocation2 + $0x4f] sm:$0xff]  ;;  %577 = vst.msk [vmem:[#allocation2 + $0xf0] sm:$0xff] %vm519_vm1, %v544_v35  ;;  %v1415_v13 = vmul.f32 %v2011_v54, %v2015_v57  ;;  %v926_v22 = vmul.f32 %v1962_v18, %v1185_v47  ;;  %v2051_v26 = vld [vmem:[#allocation2 + $0x67] sm:$0xff]  ;;  %v554_v45 = vld [vmem:[%s1921_s23 + $0xb8] sm:$0xff] }
  0x43   : > { %578 = vst.msk [vmem:[#allocation2 + $0x108] sm:$0xff] %vm519_vm1, %v545_v52  ;;  %v549_v12 = vld [vmem:[%s1921_s23 + $0x90] sm:$0xff]  ;;  %v1220_v14 = vmul.f32 %v1992_v41, %v2018_v60  ;;  %v860_v21 = vadd.f32 %v828_v11, %v762_v10  ;;  %v1318_v24 = vmul.f32 %v1997_v42, %v2029_v7  ;;  %v1416_v25 = vmul.f32 %v2011_v54, %v2031_v9  ;;  %v552_v30 = vld [vmem:[%s1921_s23 + $0xa8] sm:$0xff] }
  0x44   : > { %v1152_v3 = vadd.f32 %v1120_v53, %v1054_v56  ;;  %v1055_v4 = vadd.f32 %v1023_v59, %v957_v58  ;;  %579 = vst.msk [vmem:[#allocation2 + $0x110] sm:$0xff] %vm519_vm1, %v546_v55  ;;  %v763_v27 = vadd.f32 %v731_v16, %v633_v15  ;;  %v829_v29 = vmul.f32 %v1948_v8, %v1087_v50  ;;  %v2058_v36 = vld [vmem:[#allocation2 + $0x68] sm:$0xff]  ;;  %v553_v38 = vld [vmem:[%s1921_s23 + $0xb0] sm:$0xff] }
  0x45   : > { %580 = vst.msk [vmem:[#allocation2 + $0x128] sm:$0xff] %vm519_vm1, %v547_v62  ;;  %v958_v33 = vadd.f32 %v926_v22, %v860_v21  ;;  %v1024_v35 = vmul.f32 %v1974_v28, %v2002_v48  ;;  %v2060_v37 = vld [vmem:[#allocation2 + $0x69] sm:$0xff]  ;;  %v1122_v39 = vmul.f32 %v1983_v34, %v2015_v57  ;;  %v927_v43 = vmul.f32 %v1962_v18, %v2018_v60 }
  0x46   : > { %v1251_v19 = vadd.f32 %v1219_v63, %v1152_v3  ;;  %v1153_v20 = vadd.f32 %v1121_v1, %v1055_v4  ;;  %581 = vst.msk [vmem:[#allocation2 + $0x130] sm:$0xff] %vm519_vm1, %v548_v2  ;;  %v861_v40 = vadd.f32 %v829_v29, %v763_v27  ;;  %v634_v44 = vmul.f32 %v1936_v5, %v1185_v47  ;;  %v2073_v51 = vld [vmem:[#allocation2 + $0x6f] sm:$0xff]  ;;  %v555_v47 = vld [vmem:[%s1921_s23 + $0xc0] sm:$0xff] }
  0x47   : > { %582 = vst.msk [vmem:[#allocation2 + $0x148] sm:$0xff] %vm519_vm1, %v549_v12  ;;  %v1056_v49 = vadd.f32 %v1024_v35, %v958_v33  ;;  %v1221_v50 = vmul.f32 %v1992_v41, %v2051_v26  ;;  %v2075_v52 = vld [vmem:[#allocation2 + $0x70] sm:$0xff]  ;;  %v732_v53 = vmul.f32 %v1941_v6, %v2002_v48  ;;  %v1319_v55 = vmul.f32 %v1997_v42, %v2058_v36  ;;  %v556_v61 = vld [vmem:[%s1921_s23 + $0xc8] sm:$0xff]  ;;  %v2092_v48 = vld [vmem:[%s2573_s1] ss:$0 sm:$0xff] }
  0x48   : > { %v1349_v31 = vadd.f32 %v1317_v0, %v1251_v19  ;;  %v1252_v32 = vadd.f32 %v1220_v14, %v1153_v20  ;;  %583 = vst.msk [vmem:[#allocation2 + $0x150] sm:$0xff] %vm519_vm1, %v550_v17  ;;  %v1417_v56 = vmul.f32 %v2011_v54, %v2060_v37  ;;  %v959_v58 = vadd.f32 %v927_v43, %v861_v40  ;;  %v2094_v0 = vld [vmem:[#allocation2 + $0x71] sm:$0xff]  ;;  %v559_v17 = vld [vmem:[%s1921_s23 + $0xe0] sm:$0xff] }
  0x49   : > { %584 = vst.msk [vmem:[#allocation2 + $0x168] sm:$0xff] %vm519_vm1, %v551_v23  ;;  %v1025_v59 = vmul.f32 %v1974_v28, %v2029_v7  ;;  %v1154_v63 = vadd.f32 %v1122_v39, %v1056_v49  ;;  %v764_v1 = vadd.f32 %v732_v53, %v634_v44  ;;  %v830_v2 = vmul.f32 %v1948_v8, %v2015_v57  ;;  %v557_v3 = vld [vmem:[%s1921_s23 + $0xd0] sm:$0xff]  ;;  %v560_v23 = vld [vmem:[%s1921_s23 + $0xe8] sm:$0xff]  ;;  %v562_v35 = vld [vmem:[%s1921_s23 + $0xf8] sm:$0xff] }
  0x4a   : > { %v1350_v46 = vadd.f32 %v1318_v24, %v1252_v32  ;;  %585 = vst.msk [vmem:[#allocation2 + $0x170] sm:$0xff] %vm519_vm1, %v552_v30  ;;  %v1447_v62 = vadd.f32 %v1415_v13, %v1349_v31  ;;  %v1123_v10 = vmul.f32 %v1983_v34, %v2031_v9  ;;  %v1222_v11 = vmul.f32 %v1992_v41, %v2073_v51  ;;  %v558_v13 = vld [vmem:[%s1921_s23 + $0xd8] sm:$0xff]  ;;  %v561_v30 = vld [vmem:[%s1921_s23 + $0xf0] sm:$0xff]  ;;  %v2127_v32 = vld [vmem:[#allocation2 + $0x87] sm:$0xff] }
  0x4b   : > { %586 = vst.msk [vmem:[#allocation2 + $0x188] sm:$0xff] %vm519_vm1, %v553_v38  ;;  %v1057_v4 = vadd.f32 %v1025_v59, %v959_v58  ;;  %v1320_v12 = vmul.f32 %v1997_v42, %v2075_v52  ;;  %v1253_v15 = vadd.f32 %v1221_v50, %v1154_v63  ;;  %v862_v57 = vadd.f32 %v830_v2, %v764_v1 }
  0x4c   : > { %587 = vst.msk [vmem:[#allocation2 + $0x190] sm:$0xff] %vm519_vm1, %v554_v45  ;;  %v1448_v14 = vadd.f32 %v1416_v25, %v1350_v46  ;;  %v928_v16 = vmul.f32 %v1962_v18, %v2051_v26  ;;  %v1418_v20 = vmul.f32 %v2011_v54, %v2094_v0  ;;  %v635_v21 = vmul.f32 %v1936_v5, %v2018_v60  ;;  %v1385_v45 = vld [vmem:[#allocation2 + $0x89] sm:$0xff] }
  0x4d   : > { %588 = vst.msk [vmem:[#allocation2 + $0x1a8] sm:$0xff] %vm519_vm1, %v555_v47  ;;  %v1155_v19 = vadd.f32 %v1123_v10, %v1057_v4  ;;  %v733_v22 = vmul.f32 %v1941_v6, %v2029_v7  ;;  %v1483_v24 = vadd.f32 %v2092_v48, %v1447_v62  ;;  %v1351_v25 = vadd.f32 %v1319_v55, %v1253_v15 }
  0x4e   : > { %589 = vst.msk [vmem:[#allocation2 + $0x1b0] sm:$0xff] %vm519_vm1, %v556_v61  ;;  %v960_v27 = vadd.f32 %v928_v16, %v862_v57  ;;  %v1026_v29 = vmul.f32 %v1974_v28, %v2058_v36  ;;  %v1124_v60 = vmul.f32 %v1983_v34, %v2060_v37  ;;  %v831_v33 = vmul.f32 %v1948_v8, %v2031_v9  ;;  %v1287_v9 = vld [vmem:[#allocation2 + $0x88] sm:$0xff] }
  0x4f   : > { %590 = vst.msk [vmem:[#allocation2 + $0x1c8] sm:$0xff] %vm519_vm1, %v557_v3  ;;  %v1254_v31 = vadd.f32 %v1222_v11, %v1155_v19  ;;  %v765_v7 = vadd.f32 %v733_v22, %v635_v21  ;;  %v1484_v38 = vadd.f32 %v2092_v48, %v1448_v14  ;;  %v1449_v39 = vadd.f32 %v1417_v56, %v1351_v25  ;;  %v1288_v3 = vld [vmem:[#allocation2 + $0x90] sm:$0xff] }
  0x50   : > { %591 = vst.msk [vmem:[#allocation2 + $0x1d0] sm:$0xff] %vm519_vm1, %v558_v13  ;;  %v1058_v40 = vadd.f32 %v1026_v29, %v960_v27  ;;  %v929_v43 = vmul.f32 %v1962_v18, %v2073_v51  ;;  %v636_v49 = vmul.f32 %v1936_v5, %v2051_v26  ;;  %v734_v50 = vmul.f32 %v1941_v6, %v2058_v36  ;;  %v1190_v26 = vld [vmem:[#allocation2 + $0x8f] sm:$0xff] }
  0x51   : > { %592 = vst.msk [vmem:[#allocation2 + $0x1e8] sm:$0xff] %vm519_vm1, %v559_v17  ;;  %v1352_v44 = vadd.f32 %v1320_v12, %v1254_v31  ;;  %v863_v46 = vadd.f32 %v831_v33, %v765_v7  ;;  %v1485_v53 = vadd.f32 %v2092_v48, %v1449_v39  ;;  %v1223_v55 = vmul.f32 %v1992_v41, %v2127_v32  ;;  %v1386_v11 = vld [vmem:[#allocation2 + $0x91] sm:$0xff] }
  0x52   : > { %593 = vst.msk [vmem:[#allocation2 + $0x1f0] sm:$0xff] %vm519_vm1, %v560_v23  ;;  %v1156_v47 = vadd.f32 %v1124_v60, %v1058_v40  ;;  %v1027_v56 = vmul.f32 %v1974_v28, %v2075_v52  ;;  %v766_v61 = vadd.f32 %v734_v50, %v636_v49  ;;  %v832_v36 = vmul.f32 %v1948_v8, %v2060_v37  ;;  %v1191_v23 = vld [vmem:[#allocation2 + $0xa7] sm:$0xff] }
  0x53   : > { %594 = vst.msk [vmem:[#allocation2 + $0x208] sm:$0xff] %vm519_vm1, %v561_v30  ;;  %v1450_v58 = vadd.f32 %v1418_v20, %v1352_v44  ;;  %v961_v59 = vadd.f32 %v929_v43, %v863_v46  ;;  %v1321_v63 = vmul.f32 %v1997_v42, %v1287_v9  ;;  %v1419_v1 = vmul.f32 %v2011_v54, %v1385_v45  ;;  %v1387_v60 = vld [vmem:[#allocation2 + $0xa9] sm:$0xff] }
  0x54   : > { %595 = vst.msk [vmem:[#allocation2 + $0x210] sm:$0xff] %vm519_vm1, %v562_v35  ;;  %v1255_v62 = vadd.f32 %v1223_v55, %v1156_v47  ;;  %v1125_v2 = vmul.f32 %v1983_v34, %v2094_v0  ;;  %v864_v12 = vadd.f32 %v832_v36, %v766_v61  ;;  %v930_v37 = vmul.f32 %v1962_v18, %v2127_v32  ;;  %v1192_v46 = vld [vmem:[#allocation2 + $0xaf] sm:$0xff] }
  0x55   : > { %1515 = vst.msk [vmem:[%s2142_s25] sm:$0xff] %vm519_vm1, %v1483_v24  ;;  %v1486_v4 = vadd.f32 %v2092_v48, %v1450_v58  ;;  %v1059_v10 = vadd.f32 %v1027_v56, %v961_v59  ;;  %v1224_v14 = vmul.f32 %v1992_v41, %v1190_v26  ;;  %v637_v15 = vmul.f32 %v1936_v5, %v2073_v51  ;;  %v1289_v24 = vld [vmem:[#allocation2 + $0xa8] sm:$0xff]  ;;  %v1290_v55 = vld [vmem:[#allocation2 + $0xb0] sm:$0xff] }
  0x56   : > { %1516 = vst.msk [vmem:[%s2142_s25 + $0x8] sm:$0xff] %vm519_vm1, %v1484_v38  ;;  %v1353_v13 = vadd.f32 %v1321_v63, %v1255_v62  ;;  %v735_v57 = vmul.f32 %v1941_v6, %v2075_v52  ;;  %v1322_v17 = vmul.f32 %v1997_v42, %v1288_v3  ;;  %v962_v19 = vadd.f32 %v930_v37, %v864_v12  ;;  %v1388_v58 = vld [vmem:[#allocation2 + $0xb1] sm:$0xff] }
  0x57   : > { %1517 = vst.msk [vmem:[%s2142_s25 + $0x10] sm:$0xff] %vm519_vm1, %v1485_v53  ;;  %v1157_v16 = vadd.f32 %v1125_v2, %v1059_v10  ;;  %v1028_v20 = vmul.f32 %v1974_v28, %v1287_v9  ;;  %v1420_v22 = vmul.f32 %v2011_v54, %v1386_v11  ;;  %v833_v51 = vmul.f32 %v1948_v8, %v2094_v0 }
  0x58   : > { %1518 = vst.msk [vmem:[%s2142_s25 + $0x18] sm:$0xff] %vm519_vm1, %v1486_v4  ;;  %v1451_v21 = vadd.f32 %v1419_v1, %v1353_v13  ;;  %v767_v25 = vadd.f32 %v735_v57, %v637_v15  ;;  %v1126_v29 = vmul.f32 %v1983_v34, %v1385_v45  ;;  %v931_v30 = vmul.f32 %v1962_v18, %v1190_v26 }
  0x59   : > { %v1256_v27 = vadd.f32 %v1224_v14, %v1157_v16  ;;  %v1060_v52 = vadd.f32 %v1028_v20, %v962_v19  ;;  %v638_v33 = vmul.f32 %v1936_v5, %v2127_v32  ;;  %v736_v35 = vmul.f32 %v1941_v6, %v1287_v9  ;;  %v1193_v14 = vld [vmem:[#allocation2 + $0xc7] sm:$0xff] }
  0x5a   : > { %v1487_v31 = vadd.f32 %v2092_v48, %v1451_v21  ;;  %v865_v7 = vadd.f32 %v833_v51, %v767_v25  ;;  %v1225_v40 = vmul.f32 %v1992_v41, %v1191_v23  ;;  %v1323_v0 = vmul.f32 %v1997_v42, %v1289_v24  ;;  %v1389_v21 = vld [vmem:[#allocation2 + $0xc9] sm:$0xff] }
  0x5b   : > { %v1354_v38 = vadd.f32 %v1322_v17, %v1256_v27  ;;  %v1158_v39 = vadd.f32 %v1126_v29, %v1060_v52  ;;  %v1029_v44 = vmul.f32 %v1974_v28, %v1288_v3  ;;  %v768_v49 = vadd.f32 %v736_v35, %v638_v33 }
  0x5c   : > { %1519 = vst.msk [vmem:[%s2142_s25 + $0x20] sm:$0xff] %vm519_vm1, %v1487_v31  ;;  %v963_v43 = vadd.f32 %v931_v30, %v865_v7  ;;  %v834_v50 = vmul.f32 %v1948_v8, %v1385_v45  ;;  %v1421_v32 = vmul.f32 %v2011_v54, %v1387_v60  ;;  %v1127_v9 = vmul.f32 %v1983_v34, %v1386_v11  ;;  %v1194_v7 = vld [vmem:[#allocation2 + $0xcf] sm:$0xff] }
  0x5d   : > { %v1452_v53 = vadd.f32 %v1420_v22, %v1354_v38  ;;  %v1257_v47 = vadd.f32 %v1225_v40, %v1158_v39  ;;  %v932_v61 = vmul.f32 %v1962_v18, %v1191_v23  ;;  %v639_v36 = vmul.f32 %v1936_v5, %v1190_v26  ;;  %v1291_v26 = vld [vmem:[#allocation2 + $0xc8] sm:$0xff]  ;;  %v1292_v40 = vld [vmem:[#allocation2 + $0xd0] sm:$0xff] }
  0x5e   : > { %v1061_v56 = vadd.f32 %v1029_v44, %v963_v43  ;;  %v866_v59 = vadd.f32 %v834_v50, %v768_v49  ;;  %v1226_v45 = vmul.f32 %v1992_v41, %v1192_v46  ;;  %v737_v1 = vmul.f32 %v1941_v6, %v1288_v3  ;;  %v1390_v43 = vld [vmem:[#allocation2 + $0xd1] sm:$0xff] }
  0x5f   : > { %v1488_v62 = vadd.f32 %v2092_v48, %v1452_v53  ;;  %v1355_v63 = vadd.f32 %v1323_v0, %v1257_v47  ;;  %v1324_v4 = vmul.f32 %v1997_v42, %v1290_v55  ;;  %v1030_v12 = vmul.f32 %v1974_v28, %v1289_v24 }
  0x60   : > { %v1159_v2 = vadd.f32 %v1127_v9, %v1061_v56  ;;  %v964_v10 = vadd.f32 %v932_v61, %v866_v59  ;;  %v1422_v13 = vmul.f32 %v2011_v54, %v1388_v58  ;;  %v769_v15 = vadd.f32 %v737_v1, %v639_v36 }
  0x61   : > { %1520 = vst.msk [vmem:[%s2142_s25 + $0x28] sm:$0xff] %vm519_vm1, %v1488_v62  ;;  %v1453_v37 = vadd.f32 %v1421_v32, %v1355_v63  ;;  %v835_v57 = vmul.f32 %v1948_v8, %v1386_v11  ;;  %v1128_v3 = vmul.f32 %v1983_v34, %v1387_v60  ;;  %v933_v19 = vmul.f32 %v1962_v18, %v1192_v46  ;;  %v1195_v63 = vld [vmem:[#allocation2 + $0xe7] sm:$0xff] }
  0x62   : > { %v1258_v16 = vadd.f32 %v1226_v45, %v1159_v2  ;;  %v1062_v17 = vadd.f32 %v1030_v12, %v964_v10  ;;  %v640_v25 = vmul.f32 %v1936_v5, %v1191_v23  ;;  %v738_v51 = vmul.f32 %v1941_v6, %v1289_v24 }
  0x63   : > { %v1489_v20 = vadd.f32 %v2092_v48, %v1453_v37  ;;  %v867_v22 = vadd.f32 %v835_v57, %v769_v15  ;;  %v1227_v29 = vmul.f32 %v1992_v41, %v1193_v14  ;;  %v1325_v11 = vmul.f32 %v1997_v42, %v1291_v26  ;;  %v1391_v37 = vld [vmem:[#allocation2 + $0xe9] sm:$0xff] }
  0x64   : > { %v1356_v27 = vadd.f32 %v1324_v4, %v1258_v16  ;;  %v1160_v52 = vadd.f32 %v1128_v3, %v1062_v17  ;;  %v1031_v31 = vmul.f32 %v1974_v28, %v1290_v55  ;;  %v770_v33 = vadd.f32 %v738_v51, %v640_v25 }
  0x65   : > { %1521 = vst.msk [vmem:[%s2142_s25 + $0x30] sm:$0xff] %vm519_vm1, %v1489_v20  ;;  %v965_v30 = vadd.f32 %v933_v19, %v867_v22  ;;  %v836_v35 = vmul.f32 %v1948_v8, %v1387_v60  ;;  %v1423_v23 = vmul.f32 %v2011_v54, %v1389_v21  ;;  %v1129_v24 = vmul.f32 %v1983_v34, %v1388_v58  ;;  %v1196_v22 = vld [vmem:[#allocation2 + $0xef] sm:$0xff] }
  0x66   : > { %v1454_v38 = vadd.f32 %v1422_v13, %v1356_v27  ;;  %v1259_v39 = vadd.f32 %v1227_v29, %v1160_v52  ;;  %v934_v49 = vmul.f32 %v1962_v18, %v1193_v14  ;;  %v641_v50 = vmul.f32 %v1936_v5, %v1192_v46  ;;  %v1293_v46 = vld [vmem:[#allocation2 + $0xe8] sm:$0xff]  ;;  %v1294_v29 = vld [vmem:[#allocation2 + $0xf0] sm:$0xff] }
  0x67   : > { %v1063_v0 = vadd.f32 %v1031_v31, %v965_v30  ;;  %v868_v44 = vadd.f32 %v836_v35, %v770_v33  ;;  %v1228_v60 = vmul.f32 %v1992_v41, %v1194_v7  ;;  %v739_v32 = vmul.f32 %v1941_v6, %v1290_v55  ;;  %v1392_v30 = vld [vmem:[#allocation2 + $0xf1] sm:$0xff] }
  0x68   : > { %v1490_v53 = vadd.f32 %v2092_v48, %v1454_v38  ;;  %v1357_v47 = vadd.f32 %v1325_v11, %v1259_v39  ;;  %v1326_v56 = vmul.f32 %v1997_v42, %v1292_v40  ;;  %v1032_v61 = vmul.f32 %v1974_v28, %v1291_v26 }
  0x69   : > { %v1161_v9 = vadd.f32 %v1129_v24, %v1063_v0  ;;  %v966_v59 = vadd.f32 %v934_v49, %v868_v44  ;;  %v1424_v62 = vmul.f32 %v2011_v54, %v1390_v43  ;;  %v771_v45 = vadd.f32 %v739_v32, %v641_v50 }
  0x6a   : > { %1522 = vst.msk [vmem:[%s2142_s25 + $0x38] sm:$0xff] %vm519_vm1, %v1490_v53  ;;  %v1455_v36 = vadd.f32 %v1423_v23, %v1357_v47  ;;  %v837_v1 = vmul.f32 %v1948_v8, %v1388_v58  ;;  %v1130_v55 = vmul.f32 %v1983_v34, %v1389_v21  ;;  %v935_v10 = vmul.f32 %v1962_v18, %v1194_v7  ;;  %v1197_v47 = vld [vmem:[#allocation2 + $0x107] sm:$0xff] }
  0x6b   : > { %v1260_v2 = vadd.f32 %v1228_v60, %v1161_v9  ;;  %v1064_v4 = vadd.f32 %v1032_v61, %v966_v59  ;;  %v642_v15 = vmul.f32 %v1936_v5, %v1193_v14  ;;  %v740_v57 = vmul.f32 %v1941_v6, %v1291_v26 }
  0x6c   : > { %v1491_v12 = vadd.f32 %v2092_v48, %v1455_v36  ;;  %v869_v13 = vadd.f32 %v837_v1, %v771_v45  ;;  %v1229_v3 = vmul.f32 %v1992_v41, %v1195_v63  ;;  %v1327_v58 = vmul.f32 %v1997_v42, %v1293_v46  ;;  %v1393_v36 = vld [vmem:[#allocation2 + $0x109] sm:$0xff] }
  0x6d   : > { %v1358_v16 = vadd.f32 %v1326_v56, %v1260_v2  ;;  %v1162_v17 = vadd.f32 %v1130_v55, %v1064_v4  ;;  %v1033_v20 = vmul.f32 %v1974_v28, %v1292_v40  ;;  %v772_v25 = vadd.f32 %v740_v57, %v642_v15 }
  0x6e   : > { %1523 = vst.msk [vmem:[%s2142_s25 + $0x40] sm:$0xff] %vm519_vm1, %v1491_v12  ;;  %v967_v19 = vadd.f32 %v935_v10, %v869_v13  ;;  %v838_v51 = vmul.f32 %v1948_v8, %v1389_v21  ;;  %v1425_v14 = vmul.f32 %v2011_v54, %v1391_v37  ;;  %v1131_v26 = vmul.f32 %v1983_v34, %v1390_v43  ;;  %v1198_v13 = vld [vmem:[#allocation2 + $0x10f] sm:$0xff] }
  0x6f   : > { %v1456_v27 = vadd.f32 %v1424_v62, %v1358_v16  ;;  %v1261_v52 = vadd.f32 %v1229_v3, %v1162_v17  ;;  %v936_v33 = vmul.f32 %v1962_v18, %v1195_v63  ;;  %v643_v35 = vmul.f32 %v1936_v5, %v1194_v7  ;;  %v1295_v7 = vld [vmem:[#allocation2 + $0x108] sm:$0xff]  ;;  %v1296_v3 = vld [vmem:[#allocation2 + $0x110] sm:$0xff] }
  0x70   : > { %v1065_v11 = vadd.f32 %v1033_v20, %v967_v19  ;;  %v870_v31 = vadd.f32 %v838_v51, %v772_v25  ;;  %v1230_v21 = vmul.f32 %v1992_v41, %v1196_v22  ;;  %v741_v23 = vmul.f32 %v1941_v6, %v1292_v40  ;;  %v1394_v19 = vld [vmem:[#allocation2 + $0x111] sm:$0xff] }
  0x71   : > { %v1492_v38 = vadd.f32 %v2092_v48, %v1456_v27  ;;  %v1359_v39 = vadd.f32 %v1327_v58, %v1261_v52  ;;  %v1328_v0 = vmul.f32 %v1997_v42, %v1294_v29  ;;  %v1034_v49 = vmul.f32 %v1974_v28, %v1293_v46 }
  0x72   : > { %v1163_v24 = vadd.f32 %v1131_v26, %v1065_v11  ;;  %v968_v44 = vadd.f32 %v936_v33, %v870_v31  ;;  %v1426_v53 = vmul.f32 %v2011_v54, %v1392_v30  ;;  %v773_v60 = vadd.f32 %v741_v23, %v643_v35 }
  0x73   : > { %1524 = vst.msk [vmem:[%s2142_s25 + $0x48] sm:$0xff] %vm519_vm1, %v1492_v38  ;;  %v1457_v50 = vadd.f32 %v1425_v14, %v1359_v39  ;;  %v839_v32 = vmul.f32 %v1948_v8, %v1390_v43  ;;  %v1132_v40 = vmul.f32 %v1983_v34, %v1391_v37  ;;  %v937_v59 = vmul.f32 %v1962_v18, %v1196_v22  ;;  %v1199_v39 = vld [vmem:[#allocation2 + $0x127] sm:$0xff] }
  0x74   : > { %v1262_v9 = vadd.f32 %v1230_v21, %v1163_v24  ;;  %v1066_v56 = vadd.f32 %v1034_v49, %v968_v44  ;;  %v644_v45 = vmul.f32 %v1936_v5, %v1195_v63  ;;  %v742_v1 = vmul.f32 %v1941_v6, %v1293_v46 }
  0x75   : > { %v1493_v61 = vadd.f32 %v2092_v48, %v1457_v50  ;;  %v871_v62 = vadd.f32 %v839_v32, %v773_v60  ;;  %v1231_v55 = vmul.f32 %v1992_v41, %v1197_v47  ;;  %v1329_v43 = vmul.f32 %v1997_v42, %v1295_v7  ;;  %v1395_v50 = vld [vmem:[#allocation2 + $0x129] sm:$0xff] }
  0x76   : > { %v1360_v2 = vadd.f32 %v1328_v0, %v1262_v9  ;;  %v1164_v4 = vadd.f32 %v1132_v40, %v1066_v56  ;;  %v1035_v12 = vmul.f32 %v1974_v28, %v1294_v29  ;;  %v774_v15 = vadd.f32 %v742_v1, %v644_v45 }
  0x77   : > { %1525 = vst.msk [vmem:[%s2142_s25 + $0x50] sm:$0xff] %vm519_vm1, %v1493_v61  ;;  %v969_v10 = vadd.f32 %v937_v59, %v871_v62  ;;  %v840_v57 = vmul.f32 %v1948_v8, %v1391_v37  ;;  %v1427_v63 = vmul.f32 %v2011_v54, %v1393_v36  ;;  %v1133_v46 = vmul.f32 %v1983_v34, %v1392_v30  ;;  %v1200_v62 = vld [vmem:[#allocation2 + $0x12f] sm:$0xff] }
  0x78   : > { %v1458_v16 = vadd.f32 %v1426_v53, %v1360_v2  ;;  %v1263_v17 = vadd.f32 %v1231_v55, %v1164_v4  ;;  %v938_v25 = vmul.f32 %v1962_v18, %v1197_v47  ;;  %v645_v51 = vmul.f32 %v1936_v5, %v1196_v22  ;;  %v1297_v22 = vld [vmem:[#allocation2 + $0x128] sm:$0xff]  ;;  %v1298_v55 = vld [vmem:[#allocation2 + $0x130] sm:$0xff] }
  0x79   : > { %v1067_v58 = vadd.f32 %v1035_v12, %v969_v10  ;;  %v872_v20 = vadd.f32 %v840_v57, %v774_v15  ;;  %v1232_v37 = vmul.f32 %v1992_v41, %v1198_v13  ;;  %v743_v14 = vmul.f32 %v1941_v6, %v1294_v29  ;;  %v1396_v10 = vld [vmem:[#allocation2 + $0x131] sm:$0xff] }
  0x7a   : > { %v1494_v27 = vadd.f32 %v2092_v48, %v1458_v16  ;;  %v1361_v52 = vadd.f32 %v1329_v43, %v1263_v17  ;;  %v1330_v11 = vmul.f32 %v1997_v42, %v1296_v3  ;;  %v1036_v33 = vmul.f32 %v1974_v28, %v1295_v7 }
  0x7b   : > { %v1165_v26 = vadd.f32 %v1133_v46, %v1067_v58  ;;  %v970_v31 = vadd.f32 %v938_v25, %v872_v20  ;;  %v1428_v38 = vmul.f32 %v2011_v54, %v1394_v19  ;;  %v775_v21 = vadd.f32 %v743_v14, %v645_v51 }
  0x7c   : > { %1526 = vst.msk [vmem:[%s2142_s25 + $0x58] sm:$0xff] %vm519_vm1, %v1494_v27  ;;  %v1459_v35 = vadd.f32 %v1427_v63, %v1361_v52  ;;  %v841_v23 = vmul.f32 %v1948_v8, %v1392_v30  ;;  %v1134_v29 = vmul.f32 %v1983_v34, %v1393_v36  ;;  %v939_v44 = vmul.f32 %v1962_v18, %v1198_v13  ;;  %v1201_v52 = vld [vmem:[#allocation2 + $0x147] sm:$0xff] }
  0x7d   : > { %v1264_v24 = vadd.f32 %v1232_v37, %v1165_v26  ;;  %v1068_v0 = vadd.f32 %v1036_v33, %v970_v31  ;;  %v646_v60 = vmul.f32 %v1936_v5, %v1197_v47  ;;  %v744_v32 = vmul.f32 %v1941_v6, %v1295_v7 }
  0x7e   : > { %v1495_v49 = vadd.f32 %v2092_v48, %v1459_v35  ;;  %v873_v53 = vadd.f32 %v841_v23, %v775_v21  ;;  %v1233_v40 = vmul.f32 %v1992_v41, %v1199_v39  ;;  %v1331_v30 = vmul.f32 %v1997_v42, %v1297_v22  ;;  %v1397_v35 = vld [vmem:[#allocation2 + $0x149] sm:$0xff] }
  0x7f   : > { %v1362_v9 = vadd.f32 %v1330_v11, %v1264_v24  ;;  %v1166_v56 = vadd.f32 %v1134_v29, %v1068_v0  ;;  %v1037_v61 = vmul.f32 %v1974_v28, %v1296_v3  ;;  %v776_v45 = vadd.f32 %v744_v32, %v646_v60 }
  0x80   : > { %1527 = vst.msk [vmem:[%s2142_s25 + $0x60] sm:$0xff] %vm519_vm1, %v1495_v49  ;;  %v971_v59 = vadd.f32 %v939_v44, %v873_v53  ;;  %v842_v1 = vmul.f32 %v1948_v8, %v1393_v36  ;;  %v1429_v47 = vmul.f32 %v2011_v54, %v1395_v50  ;;  %v1135_v7 = vmul.f32 %v1983_v34, %v1394_v19  ;;  %v1202_v53 = vld [vmem:[#allocation2 + $0x14f] sm:$0xff] }
  0x81   : > { %v1460_v2 = vadd.f32 %v1428_v38, %v1362_v9  ;;  %v1265_v4 = vadd.f32 %v1233_v40, %v1166_v56  ;;  %v940_v15 = vmul.f32 %v1962_v18, %v1199_v39  ;;  %v647_v57 = vmul.f32 %v1936_v5, %v1198_v13  ;;  %v1299_v13 = vld [vmem:[#allocation2 + $0x148] sm:$0xff]  ;;  %v1300_v40 = vld [vmem:[#allocation2 + $0x150] sm:$0xff] }
  0x82   : > { %v1069_v43 = vadd.f32 %v1037_v61, %v971_v59  ;;  %v874_v12 = vadd.f32 %v842_v1, %v776_v45  ;;  %v1234_v36 = vmul.f32 %v1992_v41, %v1200_v62  ;;  %v745_v63 = vmul.f32 %v1941_v6, %v1296_v3  ;;  %v2316_v59 = vld [vmem:[#allocation2 + $0x151] sm:$0xff] }
  0x83   : > { %v1496_v16 = vadd.f32 %v2092_v48, %v1460_v2  ;;  %v1363_v17 = vadd.f32 %v1331_v30, %v1265_v4  ;;  %v1332_v58 = vmul.f32 %v1997_v42, %v1298_v55  ;;  %v1038_v25 = vmul.f32 %v1974_v28, %v1297_v22 }
  0x84   : > { %v1167_v46 = vadd.f32 %v1135_v7, %v1069_v43  ;;  %v972_v20 = vadd.f32 %v940_v15, %v874_v12  ;;  %v1430_v27 = vmul.f32 %v2011_v54, %v1396_v10  ;;  %v777_v37 = vadd.f32 %v745_v63, %v647_v57 }
  0x85   : > { %1528 = vst.msk [vmem:[%s2142_s25 + $0x68] sm:$0xff] %vm519_vm1, %v1496_v16  ;;  %v1461_v51 = vadd.f32 %v1429_v47, %v1363_v17  ;;  %v843_v14 = vmul.f32 %v1948_v8, %v1394_v19  ;;  %v1136_v3 = vmul.f32 %v1983_v34, %v1395_v50  ;;  %v941_v31 = vmul.f32 %v1962_v18, %v1200_v62  ;;  %v1301_v17 = vld [vmem:[#allocation2 + $0x168] sm:$0xff] }
  0x86   : > { %v1266_v26 = vadd.f32 %v1234_v36, %v1167_v46  ;;  %v1070_v11 = vadd.f32 %v1038_v25, %v972_v20  ;;  %v648_v21 = vmul.f32 %v1936_v5, %v1199_v39  ;;  %v746_v23 = vmul.f32 %v1941_v6, %v1297_v22 }
  0x87   : > { %v1497_v33 = vadd.f32 %v2092_v48, %v1461_v51  ;;  %v875_v38 = vadd.f32 %v843_v14, %v777_v37  ;;  %v1235_v29 = vmul.f32 %v1992_v41, %v1201_v52  ;;  %v1333_v19 = vmul.f32 %v1997_v42, %v1299_v13  ;;  %v1399_v51 = vld [vmem:[#allocation2 + $0x169] sm:$0xff] }
  0x88   : > { %v1364_v24 = vadd.f32 %v1332_v58, %v1266_v26  ;;  %v1168_v0 = vadd.f32 %v1136_v3, %v1070_v11  ;;  %v1039_v49 = vmul.f32 %v1974_v28, %v1298_v55  ;;  %v778_v60 = vadd.f32 %v746_v23, %v648_v21 }
  0x89   : > { %1529 = vst.msk [vmem:[%s2142_s25 + $0x70] sm:$0xff] %vm519_vm1, %v1497_v33  ;;  %v973_v44 = vadd.f32 %v941_v31, %v875_v38  ;;  %v844_v32 = vmul.f32 %v1948_v8, %v1395_v50  ;;  %v1431_v39 = vmul.f32 %v2011_v54, %v1397_v35  ;;  %v1137_v22 = vmul.f32 %v1983_v34, %v1396_v10  ;;  %v1204_v38 = vld [vmem:[#allocation2 + $0x16f] sm:$0xff] }
  0x8a   : > { %v1462_v9 = vadd.f32 %v1430_v27, %v1364_v24  ;;  %v1267_v56 = vadd.f32 %v1235_v29, %v1168_v0  ;;  %v942_v45 = vmul.f32 %v1962_v18, %v1201_v52  ;;  %v649_v1 = vmul.f32 %v1936_v5, %v1200_v62  ;;  %v1203_v62 = vld [vmem:[#allocation2 + $0x167] sm:$0xff]  ;;  %v2344_v29 = vld [vmem:[#allocation2 + $0x171] sm:$0xff] }
  0x8b   : > { %v1071_v30 = vadd.f32 %v1039_v49, %v973_v44  ;;  %v876_v61 = vadd.f32 %v844_v32, %v778_v60  ;;  %v1236_v50 = vmul.f32 %v1992_v41, %v1202_v53  ;;  %v747_v47 = vmul.f32 %v1941_v6, %v1298_v55  ;;  %v2350_v49 = vld [vmem:[%s2572_s0] ss:$0 sm:$0xff] }
  0x8c   : > { %v1498_v2 = vadd.f32 %v2092_v48, %v1462_v9  ;;  %v1365_v4 = vadd.f32 %v1333_v19, %v1267_v56  ;;  %v1334_v43 = vmul.f32 %v1997_v42, %v1300_v40  ;;  %v1040_v15 = vmul.f32 %v1974_v28, %v1299_v13  ;;  %v2358_v9 = vld [vmem:[%s2572_s0 + $0x1] ss:$0 sm:$0xff] }
  0x8d   : > { %v1169_v7 = vadd.f32 %v1137_v22, %v1071_v30  ;;  %v974_v12 = vadd.f32 %v942_v45, %v876_v61  ;;  %v1432_v16 = vmul.f32 %v2011_v54, %v2316_v59  ;;  %v779_v36 = vadd.f32 %v747_v47, %v649_v1  ;;  %v1205_v45 = vld [vmem:[#allocation2 + $0x187] sm:$0xff] }
  0x8e   : > { %1530 = vst.msk [vmem:[%s2142_s25 + $0x78] sm:$0xff] %vm519_vm1, %v1498_v2  ;;  %v1463_v57 = vadd.f32 %v1431_v39, %v1365_v4  ;;  %v845_v63 = vmul.f32 %v1948_v8, %v1396_v10  ;;  %v1138_v58 = vmul.f32 %v1983_v34, %v1397_v35  ;;  %v943_v20 = vmul.f32 %v1962_v18, %v1202_v53  ;;  %v1303_v1 = vld [vmem:[#allocation2 + $0x188] sm:$0xff]  ;;  %v2370_v4 = vld [vmem:[%s2572_s0 + $0x2] ss:$0 sm:$0xff] }
  0x8f   : > { %v1268_v46 = vadd.f32 %v1236_v50, %v1169_v7  ;;  %v1072_v55 = vadd.f32 %v1040_v15, %v974_v12  ;;  %v650_v37 = vmul.f32 %v1936_v5, %v1201_v52  ;;  %v748_v14 = vmul.f32 %v1941_v6, %v1299_v13  ;;  %v1302_v52 = vld [vmem:[#allocation2 + $0x170] sm:$0xff]  ;;  %v2378_v7 = vld [vmem:[%s2572_s0 + $0x3] ss:$0 sm:$0xff] }
  0x90   : > { %v1499_v25 = vadd.f32 %v2092_v48, %v1463_v57  ;;  %v877_v27 = vadd.f32 %v845_v63, %v779_v36  ;;  %v1237_v3 = vmul.f32 %v1992_v41, %v1203_v62  ;;  %v1335_v10 = vmul.f32 %v1997_v42, %v1301_v17  ;;  %v1401_v15 = vld [vmem:[#allocation2 + $0x189] sm:$0xff] }
  0x91   : > { %v1366_v26 = vadd.f32 %v1334_v43, %v1268_v46  ;;  %v1170_v11 = vadd.f32 %v1138_v58, %v1072_v55  ;;  %v1041_v33 = vmul.f32 %v1974_v28, %v1300_v40  ;;  %v780_v21 = vadd.f32 %v748_v14, %v650_v37  ;;  %v2391_v58 = vld [vmem:[%s2572_s0 + $0x4] ss:$0 sm:$0xff] }
  0x92   : > { %1531 = vst.msk [vmem:[%s2142_s25 + $0x80] sm:$0xff] %vm519_vm1, %v1499_v25  ;;  %v975_v31 = vadd.f32 %v943_v20, %v877_v27  ;;  %v846_v23 = vmul.f32 %v1948_v8, %v1397_v35  ;;  %v1433_v5 = vmul.f32 %v2011_v54, %v1399_v51  ;;  %v1139_v6 = vmul.f32 %v1983_v34, %v2316_v59  ;;  %v1206_v25 = vld [vmem:[#allocation2 + $0x18f] sm:$0xff] }
  0x93   : > { %v1464_v24 = vadd.f32 %v1432_v16, %v1366_v26  ;;  %v1269_v0 = vadd.f32 %v1237_v3, %v1170_v11  ;;  %v944_v44 = vmul.f32 %v1962_v18, %v1203_v62  ;;  %v651_v8 = vmul.f32 %v2350_v49, %v1202_v53  ;;  %v1304_v26 = vld [vmem:[#allocation2 + $0x190] sm:$0xff] }
  0x94   : > { %v1073_v13 = vadd.f32 %v1041_v33, %v975_v31  ;;  %v878_v19 = vadd.f32 %v846_v23, %v780_v21  ;;  %v1238_v32 = vmul.f32 %v1992_v41, %v1204_v38  ;;  %v749_v56 = vmul.f32 %v2358_v9, %v1300_v40  ;;  %v2403_v3 = vld [vmem:[#allocation2 + $0x191] sm:$0xff]  ;;  %v2411_v23 = vld [vmem:[%s2572_s0 + $0x6] ss:$0 sm:$0xff] }
  0x95   : > { %v1500_v35 = vadd.f32 %v2092_v48, %v1464_v24  ;;  %v1367_v60 = vadd.f32 %v1335_v10, %v1269_v0  ;;  %v1336_v39 = vmul.f32 %v1997_v42, %v1302_v52  ;;  %v1042_v30 = vmul.f32 %v1974_v28, %v1301_v17 }
  0x96   : > { %v1171_v18 = vadd.f32 %v1139_v6, %v1073_v13  ;;  %v976_v22 = vadd.f32 %v944_v44, %v878_v19  ;;  %v1434_v61 = vmul.f32 %v2011_v54, %v2344_v29  ;;  %v781_v2 = vadd.f32 %v749_v56, %v651_v8  ;;  %v2418_v6 = vld [vmem:[%s2572_s0 + $0x7] ss:$0 sm:$0xff] }
  0x97   : > { %1532 = vst.msk [vmem:[%s2142_s25 + $0x88] sm:$0xff] %vm519_vm1, %v1500_v35  ;;  %v1465_v53 = vadd.f32 %v1433_v5, %v1367_v60  ;;  %v847_v40 = vmul.f32 %v2370_v4, %v2316_v59  ;;  %v1140_v47 = vmul.f32 %v1983_v34, %v1399_v51  ;;  %v945_v43 = vmul.f32 %v2378_v7, %v1204_v38  ;;  %v1207_v35 = vld [vmem:[#allocation2 + $0x1a7] sm:$0xff] }
  0x98   : > { %v1270_v50 = vadd.f32 %v1238_v32, %v1171_v18  ;;  %v1074_v28 = vadd.f32 %v1042_v30, %v976_v22  ;;  %v652_v16 = vmul.f32 %v2350_v49, %v1203_v62  ;;  %v750_v36 = vmul.f32 %v2358_v9, %v1301_v17  ;;  %v1305_v60 = vld [vmem:[#allocation2 + $0x1a8] sm:$0xff] }
  0x99   : > { %v1501_v12 = vadd.f32 %v2092_v48, %v1465_v53  ;;  %v879_v57 = vadd.f32 %v847_v40, %v781_v2  ;;  %v1239_v46 = vmul.f32 %v1992_v41, %v1205_v45  ;;  %v1337_v34 = vmul.f32 %v1997_v42, %v1303_v1  ;;  %v2399_v42 = vld [vmem:[%s2572_s0 + $0x5] ss:$0 sm:$0xff]  ;;  %v1403_v53 = vld [vmem:[#allocation2 + $0x1a9] sm:$0xff] }
  0x9a   : > { %v1368_v59 = vadd.f32 %v1336_v39, %v1270_v50  ;;  %v1172_v63 = vadd.f32 %v1140_v47, %v1074_v28  ;;  %v1043_v20 = vmul.f32 %v2391_v58, %v1302_v52  ;;  %v782_v62 = vadd.f32 %v750_v36, %v652_v16 }
  0x9b   : > { %1533 = vst.msk [vmem:[%s2142_s25 + $0x90] sm:$0xff] %vm519_vm1, %v1501_v12  ;;  %v977_v55 = vadd.f32 %v945_v43, %v879_v57  ;;  %v848_v17 = vmul.f32 %v2370_v4, %v1399_v51  ;;  %v1435_v41 = vmul.f32 %v2011_v54, %v1401_v15  ;;  %v1141_v14 = vmul.f32 %v2399_v42, %v2344_v29  ;;  %v1208_v12 = vld [vmem:[#allocation2 + $0x1af] sm:$0xff] }
  0x9c   : > { %v1466_v27 = vadd.f32 %v1434_v61, %v1368_v59  ;;  %v1271_v37 = vadd.f32 %v1239_v46, %v1172_v63  ;;  %v946_v51 = vmul.f32 %v2378_v7, %v1205_v45  ;;  %v653_v31 = vmul.f32 %v2350_v49, %v1204_v38  ;;  %v1306_v46 = vld [vmem:[#allocation2 + $0x1b0] sm:$0xff] }
  0x9d   : > { %v1075_v11 = vadd.f32 %v1043_v20, %v977_v55  ;;  %v880_v10 = vadd.f32 %v848_v17, %v782_v62  ;;  %v1240_v24 = vmul.f32 %v2411_v23, %v1206_v25  ;;  %v751_v0 = vmul.f32 %v2358_v9, %v1302_v52  ;;  %v2447_v55 = vld [vmem:[#allocation2 + $0x1b1] sm:$0xff] }
  0x9e   : > { %v1502_v33 = vadd.f32 %v2092_v48, %v1466_v27  ;;  %v1369_v21 = vadd.f32 %v1337_v34, %v1271_v37  ;;  %v1338_v38 = vmul.f32 %v2418_v6, %v1304_v26  ;;  %v1044_v19 = vmul.f32 %v2391_v58, %v1303_v1 }
  0x9f   : > { %v1173_v5 = vadd.f32 %v1141_v14, %v1075_v11  ;;  %v978_v13 = vadd.f32 %v946_v51, %v880_v10  ;;  %v1436_v8 = vmul.f32 %v2011_v54, %v2403_v3  ;;  %v783_v52 = vadd.f32 %v751_v0, %v653_v31 }
  0xa0   : > { %1534 = vst.msk [vmem:[%s2142_s25 + $0x98] sm:$0xff] %vm519_vm1, %v1502_v33  ;;  %v1467_v44 = vadd.f32 %v1435_v41, %v1369_v21  ;;  %v849_v32 = vmul.f32 %v2370_v4, %v2344_v29  ;;  %v1142_v39 = vmul.f32 %v2399_v42, %v1401_v15  ;;  %v947_v22 = vmul.f32 %v2378_v7, %v1206_v25  ;;  %v1307_v21 = vld [vmem:[#allocation2 + $0x1c8] sm:$0xff] }
  0xa1   : > { %v1272_v56 = vadd.f32 %v1240_v24, %v1173_v5  ;;  %v1076_v18 = vadd.f32 %v1044_v19, %v978_v13  ;;  %v654_v2 = vmul.f32 %v2350_v49, %v1205_v45  ;;  %v752_v54 = vmul.f32 %v2358_v9, %v1303_v1  ;;  %v2442_v45 = vld [vmem:[%s2572_s0 + $0x8] ss:$0 sm:$0xff] }
  0xa2   : > { %v1503_v30 = vadd.f32 %v2092_v48, %v1467_v44  ;;  %v881_v61 = vadd.f32 %v849_v32, %v783_v52  ;;  %v1241_v28 = vmul.f32 %v2411_v23, %v1207_v35  ;;  %v1339_v29 = vmul.f32 %v2418_v6, %v1305_v60  ;;  %v1405_v44 = vld [vmem:[#allocation2 + $0x1c9] sm:$0xff] }
  0xa3   : > { %v1370_v40 = vadd.f32 %v1338_v38, %v1272_v56  ;;  %v1174_v50 = vadd.f32 %v1142_v39, %v1076_v18  ;;  %v1045_v43 = vmul.f32 %v2391_v58, %v1304_v26  ;;  %v784_v57 = vadd.f32 %v752_v54, %v654_v2 }
  0xa4   : > { %1535 = vst.msk [vmem:[%s2142_s25 + $0xa0] sm:$0xff] %vm519_vm1, %v1503_v30  ;;  %v979_v47 = vadd.f32 %v947_v22, %v881_v61  ;;  %v850_v16 = vmul.f32 %v2370_v4, %v1401_v15  ;;  %v1437_v1 = vmul.f32 %v2442_v45, %v1403_v53  ;;  %v1143_v63 = vmul.f32 %v2399_v42, %v2403_v3  ;;  %v1210_v61 = vld [vmem:[#allocation2 + $0x1cf] sm:$0xff] }
  0xa5   : > { %v1468_v36 = vadd.f32 %v1436_v8, %v1370_v40  ;;  %v1273_v59 = vadd.f32 %v1241_v28, %v1174_v50  ;;  %v948_v15 = vmul.f32 %v2378_v7, %v1207_v35  ;;  %v655_v62 = vmul.f32 %v2350_v49, %v1206_v25  ;;  %v1209_v25 = vld [vmem:[#allocation2 + $0x1c7] sm:$0xff]  ;;  %v1308_v50 = vld [vmem:[#allocation2 + $0x1d0] sm:$0xff] }
  0xa6   : > { %v1077_v34 = vadd.f32 %v1045_v43, %v979_v47  ;;  %v882_v20 = vadd.f32 %v850_v16, %v784_v57  ;;  %v1242_v37 = vmul.f32 %v2411_v23, %v1208_v12  ;;  %v753_v41 = vmul.f32 %v2358_v9, %v1304_v26 }
  0xa7   : > { %v1504_v17 = vadd.f32 %v2092_v48, %v1468_v36  ;;  %v1371_v27 = vadd.f32 %v1339_v29, %v1273_v59  ;;  %v1340_v11 = vmul.f32 %v2418_v6, %v1306_v46  ;;  %v1046_v51 = vmul.f32 %v2391_v58, %v1305_v60  ;;  %v1406_v29 = vld [vmem:[#allocation2 + $0x1d1] sm:$0xff] }
  0xa8   : > { %v1175_v14 = vadd.f32 %v1143_v63, %v1077_v34  ;;  %v980_v10 = vadd.f32 %v948_v15, %v882_v20  ;;  %v1438_v33 = vmul.f32 %v2442_v45, %v2447_v55  ;;  %v785_v24 = vadd.f32 %v753_v41, %v655_v62 }
  0xa9   : > { %1536 = vst.msk [vmem:[%s2142_s25 + $0xa8] sm:$0xff] %vm519_vm1, %v1504_v17  ;;  %v1469_v31 = vadd.f32 %v1437_v1, %v1371_v27  ;;  %v851_v0 = vmul.f32 %v2370_v4, %v2403_v3  ;;  %v1144_v38 = vmul.f32 %v2399_v42, %v1403_v53  ;;  %v949_v13 = vmul.f32 %v2378_v7, %v1208_v12  ;;  %v1211_v17 = vld [vmem:[#allocation2 + $0x1e7] sm:$0xff] }
  0xaa   : > { %v1274_v26 = vadd.f32 %v1242_v37, %v1175_v14  ;;  %v1078_v5 = vadd.f32 %v1046_v51, %v980_v10  ;;  %v656_v52 = vmul.f32 %v2350_v49, %v1207_v35  ;;  %v754_v32 = vmul.f32 %v2358_v9, %v1305_v60  ;;  %v1309_v27 = vld [vmem:[#allocation2 + $0x1e8] sm:$0xff] }
  0xab   : > { %v1505_v19 = vadd.f32 %v2092_v48, %v1469_v31  ;;  %v883_v8 = vadd.f32 %v851_v0, %v785_v24  ;;  %v1243_v39 = vmul.f32 %v2411_v23, %v1209_v25  ;;  %v1341_v3 = vmul.f32 %v2418_v6, %v1307_v21  ;;  %v1407_v31 = vld [vmem:[#allocation2 + $0x1e9] sm:$0xff] }
  0xac   : > { %v1372_v56 = vadd.f32 %v1340_v11, %v1274_v26  ;;  %v1176_v18 = vadd.f32 %v1144_v38, %v1078_v5  ;;  %v1047_v30 = vmul.f32 %v2391_v58, %v1306_v46  ;;  %v786_v2 = vadd.f32 %v754_v32, %v656_v52 }
  0xad   : > { %1537 = vst.msk [vmem:[%s2142_s25 + $0xb0] sm:$0xff] %vm519_vm1, %v1505_v19  ;;  %v981_v22 = vadd.f32 %v949_v13, %v883_v8  ;;  %v852_v48 = vmul.f32 %v2370_v4, %v1403_v53  ;;  %v1439_v35 = vmul.f32 %v2442_v45, %v1405_v44  ;;  %v1145_v60 = vmul.f32 %v2399_v42, %v2447_v55  ;;  %v2481_v53 = vld [vmem:[%s2573_s1] ss:$0 sm:$0xff]  ;;  %v1212_v8 = vld [vmem:[#allocation2 + $0x1ef] sm:$0xff] }
  0xae   : > { %v1470_v54 = vadd.f32 %v1438_v33, %v1372_v56  ;;  %v1275_v40 = vadd.f32 %v1243_v39, %v1176_v18  ;;  %v950_v43 = vmul.f32 %v2378_v7, %v1209_v25  ;;  %v657_v57 = vmul.f32 %v2350_v49, %v1208_v12  ;;  %v1310_v39 = vld [vmem:[#allocation2 + $0x1f0] sm:$0xff] }
  0xaf   : > { %v1079_v28 = vadd.f32 %v1047_v30, %v981_v22  ;;  %v884_v47 = vadd.f32 %v852_v48, %v786_v2  ;;  %v1244_v59 = vmul.f32 %v2411_v23, %v1210_v61  ;;  %v755_v1 = vmul.f32 %v2358_v9, %v1306_v46  ;;  %v1408_v22 = vld [vmem:[#allocation2 + $0x1f1] sm:$0xff] }
  0xb0   : > { %v1506_v16 = vadd.f32 %v2481_v53, %v1470_v54  ;;  %v1373_v36 = vadd.f32 %v1341_v3, %v1275_v40  ;;  %v1342_v34 = vmul.f32 %v2418_v6, %v1308_v50  ;;  %v1048_v15 = vmul.f32 %v2391_v58, %v1307_v21 }
  0xb1   : > { %v1177_v63 = vadd.f32 %v1145_v60, %v1079_v28  ;;  %v982_v20 = vadd.f32 %v950_v43, %v884_v47  ;;  %v1440_v62 = vmul.f32 %v2442_v45, %v1406_v29  ;;  %v787_v37 = vadd.f32 %v755_v1, %v657_v57 }
  0xb2   : > { %1538 = vst.msk [vmem:[%s2142_s25 + $0xb8] sm:$0xff] %vm519_vm1, %v1506_v16  ;;  %v1471_v12 = vadd.f32 %v1439_v35, %v1373_v36  ;;  %v853_v41 = vmul.f32 %v2370_v4, %v2447_v55  ;;  %v1146_v11 = vmul.f32 %v2399_v42, %v1405_v44  ;;  %v951_v10 = vmul.f32 %v2378_v7, %v1210_v61  ;;  %v1213_v36 = vld [vmem:[#allocation2 + $0x207] sm:$0xff] }
  0xb3   : > { %v1276_v14 = vadd.f32 %v1244_v59, %v1177_v63  ;;  %v1080_v46 = vadd.f32 %v1048_v15, %v982_v20  ;;  %v658_v24 = vmul.f32 %v2350_v49, %v1209_v25  ;;  %v756_v0 = vmul.f32 %v2358_v9, %v1307_v21  ;;  %v1311_v15 = vld [vmem:[#allocation2 + $0x208] sm:$0xff] }
  0xb4   : > { %v1507_v51 = vadd.f32 %v2481_v53, %v1471_v12  ;;  %v885_v33 = vadd.f32 %v853_v41, %v787_v37  ;;  %v1245_v38 = vmul.f32 %v2411_v23, %v1211_v17  ;;  %v1343_v55 = vmul.f32 %v2418_v6, %v1309_v27  ;;  %v1409_v12 = vld [vmem:[#allocation2 + $0x209] sm:$0xff] }
  0xb5   : > { %v1374_v26 = vadd.f32 %v1342_v34, %v1276_v14  ;;  %v1178_v5 = vadd.f32 %v1146_v11, %v1080_v46  ;;  %v1049_v19 = vmul.f32 %v2391_v58, %v1308_v50  ;;  %v788_v52 = vadd.f32 %v756_v0, %v658_v24 }
  0xb6   : > { %1539 = vst.msk [vmem:[%s2142_s25 + $0xc0] sm:$0xff] %vm519_vm1, %v1507_v51  ;;  %v983_v13 = vadd.f32 %v951_v10, %v885_v33  ;;  %v854_v32 = vmul.f32 %v2370_v4, %v1405_v44  ;;  %v1441_v25 = vmul.f32 %v2442_v45, %v1407_v31  ;;  %v1147_v21 = vmul.f32 %v2399_v42, %v1406_v29  ;;  %v1214_v51 = vld [vmem:[#allocation2 + $0x20f] sm:$0xff] }
  0xb7   : > { %v1472_v56 = vadd.f32 %v1440_v62, %v1374_v26  ;;  %v1277_v18 = vadd.f32 %v1245_v38, %v1178_v5  ;;  %v952_v2 = vmul.f32 %v2378_v7, %v1211_v17  ;;  %v659_v48 = vmul.f32 %v2350_v49, %v1210_v61  ;;  %v1312_v38 = vld [vmem:[#allocation2 + $0x210] sm:$0xff] }
  0xb8   : > { %v1081_v3 = vadd.f32 %v1049_v19, %v983_v13  ;;  %v886_v30 = vadd.f32 %v854_v32, %v788_v52  ;;  %v1246_v44 = vmul.f32 %v2411_v23, %v1212_v8  ;;  %v757_v35 = vmul.f32 %v2358_v9, %v1308_v50 }
  0xb9   : > { %v1508_v54 = vadd.f32 %v2481_v53, %v1472_v56  ;;  %v1375_v40 = vadd.f32 %v1343_v55, %v1277_v18  ;;  %v1344_v28 = vmul.f32 %v2418_v6, %v1310_v39  ;;  %v1050_v43 = vmul.f32 %v2391_v58, %v1309_v27  ;;  %v1215_v18 = vld [vmem:[#allocation2 + $0x227] sm:$0xff] }
  0xba   : > { %v1179_v60 = vadd.f32 %v1147_v21, %v1081_v3  ;;  %v984_v47 = vadd.f32 %v952_v2, %v886_v30  ;;  %v1442_v16 = vmul.f32 %v2442_v45, %v1408_v22  ;;  %v789_v61 = vadd.f32 %v757_v35, %v659_v48 }
  0xbb   : > { %1540 = vst.msk [vmem:[%s2142_s25 + $0xc8] sm:$0xff] %vm519_vm1, %v1508_v54  ;;  %v1473_v57 = vadd.f32 %v1441_v25, %v1375_v40  ;;  %v855_v59 = vmul.f32 %v2370_v4, %v1406_v29  ;;  %v1148_v50 = vmul.f32 %v2399_v42, %v1407_v31  ;;  %v953_v34 = vmul.f32 %v2378_v7, %v1212_v8  ;;  %v1410_v54 = vld [vmem:[#allocation2 + $0x211] sm:$0xff] }
  0xbc   : > { %v1278_v1 = vadd.f32 %v1246_v44, %v1179_v60  ;;  %v1082_v63 = vadd.f32 %v1050_v43, %v984_v47  ;;  %v660_v37 = vmul.f32 %v2350_v49, %v1211_v17  ;;  %v758_v41 = vmul.f32 %v2358_v9, %v1309_v27 }
  0xbd   : > { %v1509_v20 = vadd.f32 %v2481_v53, %v1473_v57  ;;  %v887_v62 = vadd.f32 %v855_v59, %v789_v61  ;;  %v1247_v11 = vmul.f32 %v2411_v23, %v1213_v36  ;;  %v1051_v29 = vmul.f32 %v2391_v58, %v1310_v39 }
  0xbe   : > { %v1376_v14 = vadd.f32 %v1344_v28, %v1278_v1  ;;  %v1180_v46 = vadd.f32 %v1148_v50, %v1082_v63  ;;  %v790_v33 = vadd.f32 %v758_v41, %v660_v37  ;;  %v856_v24 = vmul.f32 %v2370_v4, %v1407_v31  ;;  %v1313_v28 = vld [vmem:[#allocation2 + $0x228] sm:$0xff]  ;;  %v1412_v41 = vld [vmem:[#allocation2 + $0x231] sm:$0xff] }
  0xbf   : > { %1541 = vst.msk [vmem:[%s2142_s25 + $0xd0] sm:$0xff] %vm519_vm1, %v1509_v20  ;;  %v985_v10 = vadd.f32 %v953_v34, %v887_v62  ;;  %v954_v0 = vmul.f32 %v2378_v7, %v1213_v36  ;;  %v1345_v17 = vmul.f32 %v2418_v6, %v1311_v15  ;;  %v1443_v27 = vmul.f32 %v2442_v45, %v1409_v12  ;;  %v1216_v36 = vld [vmem:[#allocation2 + $0x22f] sm:$0xff] }
  0xc0   : > { %v1474_v26 = vadd.f32 %v1442_v16, %v1376_v14  ;;  %v1279_v5 = vadd.f32 %v1247_v11, %v1180_v46  ;;  %v1149_v13 = vmul.f32 %v2399_v42, %v1408_v22  ;;  %v888_v19 = vadd.f32 %v856_v24, %v790_v33  ;;  %v1314_v62 = vld [vmem:[#allocation2 + $0x230] sm:$0xff] }
  0xc1   : > { %v1083_v55 = vadd.f32 %v1051_v29, %v985_v10  ;;  %v661_v52 = vmul.f32 %v2350_v49, %v1212_v8  ;;  %v1248_v31 = vmul.f32 %v2411_v23, %v1214_v51  ;;  %v759_v25 = vmul.f32 %v2358_v9, %v1310_v39 }
  0xc2   : > { %v1510_v32 = vadd.f32 %v2481_v53, %v1474_v26  ;;  %v1377_v56 = vadd.f32 %v1345_v17, %v1279_v5  ;;  %v1346_v3 = vmul.f32 %v2418_v6, %v1312_v38  ;;  %v986_v30 = vadd.f32 %v954_v0, %v888_v19 }
  0xc3   : > { %v1181_v21 = vadd.f32 %v1149_v13, %v1083_v55  ;;  %v1052_v2 = vmul.f32 %v2391_v58, %v1311_v15  ;;  %v791_v49 = vadd.f32 %v759_v25, %v661_v52  ;;  %v857_v8 = vmul.f32 %v2370_v4, %v1408_v22  ;;  %v1411_v4 = vld [vmem:[#allocation2 + $0x229] sm:$0xff] }
  0xc4   : > { %1542 = vst.msk [vmem:[%s2142_s25 + $0xd8] sm:$0xff] %vm519_vm1, %v1510_v32  ;;  %v1475_v48 = vadd.f32 %v1443_v27, %v1377_v56  ;;  %v955_v40 = vmul.f32 %v2378_v7, %v1214_v51  ;;  %v1150_v9 = vmul.f32 %v2399_v42, %v1409_v12  ;;  %v1249_v39 = vmul.f32 %v2411_v23, %v1215_v18 }
  0xc5   : > { %v1280_v44 = vadd.f32 %v1248_v31, %v1181_v21  ;;  %v1084_v35 = vadd.f32 %v1052_v2, %v986_v30  ;;  %v889_v47 = vadd.f32 %v857_v8, %v791_v49  ;;  %v1444_v57 = vmul.f32 %v2442_v45, %v1410_v54 }
  0xc6   : > { %v1511_v60 = vadd.f32 %v2481_v53, %v1475_v48  ;;  %v1053_v22 = vmul.f32 %v2391_v58, %v1312_v38  ;;  %v1347_v1 = vmul.f32 %v2418_v6, %v1313_v28  ;;  %v1151_v50 = vmul.f32 %v2399_v42, %v1410_v54 }
  0xc7   : > { %v1378_v43 = vadd.f32 %v1346_v3, %v1280_v44  ;;  %v1182_v16 = vadd.f32 %v1150_v9, %v1084_v35  ;;  %v987_v7 = vadd.f32 %v955_v40, %v889_v47  ;;  %v1250_v34 = vmul.f32 %v2411_v23, %v1216_v36 }
  0xc8   : > { %1543 = vst.msk [vmem:[%s2142_s25 + $0xe0] sm:$0xff] %vm519_vm1, %v1511_v60  ;;  %v1445_v12 = vmul.f32 %v2442_v45, %v1411_v4  ;;  %v1348_v46 = vmul.f32 %v2418_v6, %v1314_v62  ;;  %v1446_v23 = vmul.f32 %v2442_v45, %v1412_v41 }
  0xc9   : > { %v1476_v61 = vadd.f32 %v1444_v57, %v1378_v43  ;;  %v1281_v59 = vadd.f32 %v1249_v39, %v1182_v16  ;;  %v1085_v63 = vadd.f32 %v1053_v22, %v987_v7 }
  0xcb   : > { %v1512_v20 = vadd.f32 %v2481_v53, %v1476_v61  ;;  %v1379_v15 = vadd.f32 %v1347_v1, %v1281_v59  ;;  %v1183_v37 = vadd.f32 %v1151_v50, %v1085_v63 }
  0xcd   : > { %1544 = vst.msk [vmem:[%s2142_s25 + $0xe8] sm:$0xff] %vm519_vm1, %v1512_v20  ;;  %v1477_v58 = vadd.f32 %v1445_v12, %v1379_v15  ;;  %v1282_v14 = vadd.f32 %v1250_v34, %v1183_v37 }
  0xcf   : > { %v1513_v11 = vadd.f32 %v2481_v53, %v1477_v58  ;;  %v1380_v42 = vadd.f32 %v1348_v46, %v1282_v14 }
  0xd1   : > { %1545 = vst.msk [vmem:[%s2142_s25 + $0xf0] sm:$0xff] %vm519_vm1, %v1513_v11  ;;  %v1478_v29 = vadd.f32 %v1446_v23, %v1380_v42 }
  0xd3   : > { %v1514_v10 = vadd.f32 %v2481_v53, %v1478_v29 }
  0xd5   : > { %1546 = vst.msk [vmem:[%s2142_s25 + $0xf8] sm:$0xff] %vm519_vm1, %v1514_v10 }
  0xd6 PF: > { %s15_s20 = sadd.s32 1, %s1823_s20   ;;  %s2578_s18 = smov %s1819_s19 }
  0xd7   : > { %p12_p5 = scmp.ge.s32.totalorder %s15_s20, 4   ;;  %s2579_s19 = smov %s2581_s3 }
  0xd9   :  { %14 = sbr.rel (!%p12_p5) target bundleno = 2 (0x2), region = 85 }

</bundles_post_ra>
